<compile_context>
chip_gen: v5e
topology: v5e:2x2
jax: 0.10.0
libtpu: 0.0.40
codegen_flags: <defaults>
</compile_context>

<pallas_src>
import math
import numpy as np

import jax
import jax.numpy as jnp
from jax import lax
from jax.experimental import pallas as pl
from jax.experimental.pallas import tpu as pltpu


_HALO_ROWS = 8  # halo block height (multiple of 8); must cover gaussian r + 3 extra rows


# ----------------------------------------------------------------------------
# Deterministic parameter construction (mirrors get_state_dict in cannydet).
# ----------------------------------------------------------------------------
def gaussian_1d(n, std):
    x = np.arange(n, dtype=np.float64) - (n - 1) / 2.0
    return np.exp(-0.5 * (x / std) ** 2).astype(np.float32)   # scipy-style, unnormalized


def make_weights(filter_size=5, std=1.0):
    g = gaussian_1d(filter_size, std)
    gh = g.reshape(1, 1, 1, filter_size)                       # gaussian_filter_horizontal
    gv = g.reshape(1, 1, filter_size, 1)                       # gaussian_filter_vertical
    sobel = np.array([[1., 0., -1.], [2., 0., -2.], [1., 0., -1.]], np.float32)
    sh = sobel.reshape(1, 1, 3, 3)                              # sobel_filter_horizontal
    sv = sobel.T.copy().reshape(1, 1, 3, 3)                     # sobel_filter_vertical
    # directional_filter: 8 filters, +1 at center, -1 at E,SE,S,SW,W,NW,N,NE
    offsets = [(0, 1), (1, 1), (1, 0), (1, -1), (0, -1), (-1, -1), (-1, 0), (-1, 1)]
    df = np.zeros((8, 1, 3, 3), np.float32)
    for k, (dy, dx) in enumerate(offsets):
        df[k, 0, 1, 1] = 1.0
        df[k, 0, 1 + dy, 1 + dx] = -1.0
    cf = np.array([[1., 1., 1.], [1., 0., 1.], [1., 1., 1.]], np.float32).reshape(1, 1, 3, 3)
    return gh, gv, sh, sv, df, cf


# ----------------------------------------------------------------------------
# Tile-height selection (VMEM budget model; budget sized for v7x 64 MiB/TC).
# ----------------------------------------------------------------------------
def _pick_tile_rows(H, W, Wp, budget_bytes):
    """Largest multiple-of-8 output-tile height whose estimated footprint fits.

    Footprint (f32): ~16 window-shaped live planes of (TH + 2*HALO, Wp) (scratch +
    compiler temporaries) + double-buffered input blocks (3 ch, TH + 2*HALO rows, W)
    + double-buffered output blocks (TH rows, W).
    """
    live_planes = 16
    halo = 2 * _HALO_ROWS
    per_row = live_planes * Wp * 4 + (2 * 3 + 2) * W * 4
    fixed = live_planes * halo * Wp * 4 + 2 * 3 * halo * W * 4
    th = (budget_bytes - fixed) // per_row
    th = max(8, (th // 8) * 8)
    th = min(th, 256)
    th = min(th, -(-H // 8) * 8)
    return int(th)


# ----------------------------------------------------------------------------
# Pallas kernel
# ----------------------------------------------------------------------------
def make_canny_kernel(H, W, TH, WINR, Wp, gauss_taps, threshold1=10.0, threshold2=100.0):
    low = float(min(threshold1, threshold2))
    high = float(max(threshold1, threshold2))
    TAN_22_5 = 0.41421356237309503  # tan(22.5 deg)
    g = [float(v) for v in np.asarray(gauss_taps).reshape(-1)]
    r = len(g) // 2                 # gaussian radius (2 for filter_size=5)
    HLO = _HALO_ROWS
    assert r + 3 <= HLO, "halo too small for the gaussian/sobel/NMS/connect cascade"
    assert WINR == TH + 2 * HLO

    def kernel(top_ref, mid_ref, bot_ref, out_ref, win_ref):
        f32 = jnp.float32
        row0 = pl.program_id(1) * TH            # first output image row of this tile

        def shift(x, dy, dx):
            # result[i, j] = x[i + dy, j + dx]; zero-padding semantics are provided by
            # masked planes (rows outside the image / cols >= W are zero) and by the
            # >= r columns of zero lane slack, so roll wrap never reaches valid pixels.
            y = x
            if dy:
                y = pltpu.roll(y, (-dy) % WINR, 0)   # sublane rotation (XLU)
            if dx:
                y = pltpu.roll(y, (-dx) % Wp, 1)     # lane rotation (XLU)
            return y

        def image_coords():
            wrow = lax.broadcasted_iota(jnp.int32, (WINR, Wp), 0)
            col = lax.broadcasted_iota(jnp.int32, (WINR, Wp), 1)
            return wrow + (row0 - HLO), col

        img_row, col = image_coords()
        valid = (img_row >= 0) & (img_row < H) & (col < W)

        grad_mag = jnp.zeros((WINR, Wp), f32)
        gx_sum = jnp.zeros((WINR, Wp), f32)
        gy_sum = jnp.zeros((WINR, Wp), f32)

        for c in range(3):
            # Assemble this channel's halo window in the lane-padded scratch; slack
            # columns / out-of-image rows are killed by the `valid` mask on read.
            win_ref[0:HLO, 0:W] = top_ref[0, c].astype(f32)
            win_ref[HLO:HLO + TH, 0:W] = mid_ref[0, c].astype(f32)
            win_ref[HLO + TH:WINR, 0:W] = bot_ref[0, c].astype(f32)
            xc = jnp.where(valid, win_ref[...], 0.0)

            # separable gaussian blur (symmetric taps folded: 3 muls per pass)
            bh = g[r] * xc
            for k in range(1, r + 1):
                bh = bh + g[r - k] * (shift(xc, 0, -k) + shift(xc, 0, k))
            bl = g[r] * bh
            for k in range(1, r + 1):
                bl = bl + g[r - k] * (shift(bh, -k, 0) + shift(bh, k, 0))
            bl = jnp.where(valid, bl, 0.0)       # re-apply per-stage zero padding

            # separable sobel: gx = [1,2,1]^T smooth then [1,0,-1] horizontal,
            #                  gy = [1,2,1]   smooth then [1,0,-1] vertical.
            s = shift(bl, -1, 0) + 2.0 * bl + shift(bl, 1, 0)
            t = shift(bl, 0, -1) + 2.0 * bl + shift(bl, 0, 1)
            gx = shift(s, 0, -1) - shift(s, 0, 1)
            gy = shift(t, -1, 0) - shift(t, 1, 0)

            grad_mag = grad_mag + jnp.sqrt(gx * gx + gy * gy)
            gx_sum = gx_sum + gx
            gy_sum = gy_sum + gy

        gm = jnp.where(valid, grad_mag, 0.0)     # zero-pad before neighbour filters

        # NMS: the 8-way torch.gather collapses to a 4-way select of max(neighbour pair)
        # since min(gm - n_pos, gm - n_neg) > 0  <=>  gm > max(n_pos, n_neg).
        # Pairs are folded immediately so the shifted planes die as soon as consumed.
        pair_h = jnp.maximum(shift(gm, 0, 1), shift(gm, 0, -1))        # E / W
        s_n = shift(gm, 1, 0)
        n_n = shift(gm, -1, 0)
        pair_v = jnp.maximum(s_n, n_n)                                 # S / N
        pair_d1 = jnp.maximum(shift(s_n, 0, 1), shift(n_n, 0, -1))     # SE / NW
        pair_d2 = jnp.maximum(shift(s_n, 0, -1), shift(n_n, 0, 1))     # SW / NE

        # Orientation sector (== round(atan2(gy,gx)/45deg) mod 8) via comparisons;
        # only the axis (mod 4) matters for NMS.
        # TODO(synk): ties at exact 22.5-degree multiples use strict < instead of
        # torch.round's half-to-even (measure zero for float inputs).
        axv = jnp.abs(gx_sum)
        ayv = jnp.abs(gy_sum)
        horiz = ayv < TAN_22_5 * axv
        vert = axv < TAN_22_5 * ayv
        zerog = (gx_sum == 0.0) & (gy_sum == 0.0)   # atan2(0,0)=0 -> E/W axis
        same_sign = (gx_sum >= 0.0) == (gy_sum >= 0.0)

        nbr_max = jnp.where(same_sign, pair_d1, pair_d2)
        nbr_max = jnp.where(vert, pair_v, nbr_max)
        nbr_max = jnp.where(horiz | zerog, pair_h, nbr_max)
        is_max = gm > nbr_max

        # hysteresis thresholding (identical sequencing to the torch forward)
        thin = jnp.where(is_max, gm, 0.0)
        th = jnp.where(thin < low, 0.0, thin)
        higher = thin > high
        th = jnp.where(higher, 1.0, th)

        hf = higher.astype(f32)
        rsum = shift(hf, -1, 0) + hf + shift(hf, 1, 0)
        box = shift(rsum, 0, -1) + rsum + shift(rsum, 0, 1)
        connect = box - hf                           # ring (8-connect) filter

        middle = (thin >= low) & (thin <= high)
        th = jnp.where(middle, 0.0, th)
        connect = jnp.where(middle, connect, 0.0)
        th = jnp.where(connect > 0.0, 1.0, th)

        # image-border zeroing (iotas regenerated so the int planes need not stay live)
        img_row2, col2 = image_coords()
        border = ((img_row2 == 0) | (img_row2 == H - 1) |
                  (col2 == 0) | (col2 == W - 1))
        th = jnp.where(border, 0.0, th)

        out_ref[0, 0] = (th[HLO:HLO + TH, 0:W] > 0.0).astype(out_ref.dtype)

    return kernel


def canny_pallas(img, weights, threshold1=10.0, threshold2=100.0,
                 tile_rows=None, vmem_budget_bytes=20 * 1024 * 1024):
    B, C, H, W = img.shape
    assert C >= 3, "CannyDetector expects an RGB input"
    gauss = np.asarray(weights[0]).reshape(-1)
    r = max(int(gauss.shape[0]) // 2, 1)
    HLO = _HALO_ROWS

    # Lane-padded working width with >= r zero slack columns.  The padding lives only
    # in the in-kernel VMEM scratch; the HBM input / output stay unpadded.
    Wp = -(-(W + r) // 128) * 128

    TH = _pick_tile_rows(H, W, Wp, vmem_budget_bytes) if tile_rows is None else int(tile_rows)
    assert TH % 8 == 0 and TH >= 8
    WINR = TH + 2 * HLO
    NT = -(-H // TH)                 # row tiles
    NB8 = -(-H // 8)                 # 8-row blocks in the image (halo index clamping)
    th8 = TH // 8

    kernel = make_canny_kernel(H, W, TH, WINR, Wp, gauss, threshold1, threshold2)

    # Three views of the same input: 8-row halo above, TH-row body, 8-row halo below.
    # Halo block indices are clamped at the image edges; the rows they then carry are
    # masked inside the kernel via the global image-row validity mask.
    top_spec = pl.BlockSpec((1, 3, HLO, W),
                            lambda b, t: (b, 0, jnp.maximum(t * th8 - 1, 0), 0))
    mid_spec = pl.BlockSpec((1, 3, TH, W), lambda b, t: (b, 0, t, 0))
    bot_spec = pl.BlockSpec((1, 3, HLO, W),
                            lambda b, t: (b, 0, jnp.minimum(t * th8 + th8, NB8 - 1), 0))
    out_spec = pl.BlockSpec((1, 1, TH, W), lambda b, t: (b, 0, t, 0))

    out = pl.pallas_call(
        kernel,
        out_shape=jax.ShapeDtypeStruct((B, 1, H, W), jnp.float32),
        grid=(B, NT),
        in_specs=[top_spec, mid_spec, bot_spec],
        out_specs=out_spec,
        scratch_shapes=[pltpu.VMEM((WINR, Wp), jnp.float32)],
        compiler_params=pltpu.CompilerParams(
            # TODO(synk): on v7x mark the tile axis CORE_PARALLEL (or use pl.core_map)
            # so both TensorCores are used.
            dimension_semantics=("parallel", "parallel"),
            vmem_limit_bytes=48 * 1024 * 1024,
        ),
    )(img, img, img)
    return out


# ----------------------------------------------------------------------------
# Pure-JAX reference (mirrors the PyTorch forward, uses real conv / atan2).
# ----------------------------------------------------------------------------
def canny_reference(img, weights, threshold1=10.0, threshold2=100.0):
    gh, gv, sh, sv, df, cf = [jnp.asarray(w) for w in weights]

    def conv(x, w, ph, pw):
        return lax.conv_general_dilated(
            x, w, window_strides=(1, 1), padding=((ph, ph), (pw, pw)),
            dimension_numbers=('NCHW', 'OIHW', 'NCHW'))

    blurred = [conv(conv(img[:, c:c + 1], gh, 0, 2), gv, 2, 0) for c in range(3)]
    gx = [conv(b, sh, 1, 1) for b in blurred]
    gy = [conv(b, sv, 1, 1) for b in blurred]
    grad_mag = sum(jnp.sqrt(gx[c] ** 2 + gy[c] ** 2) for c in range(3))
    ori = jnp.arctan2(sum(gy), sum(gx)) * (180.0 / math.pi) + 180.0
    ori = jnp.round(ori / 45.0) * 45.0
    all_f = conv(grad_mag, df, 1, 1)
    idx_pos = (ori / 45.0 % 8.0).astype(jnp.int32)
    idx_neg = ((ori / 45.0 + 4.0) % 8.0).astype(jnp.int32)
    pos = jnp.take_along_axis(all_f, idx_pos, axis=1)
    neg = jnp.take_along_axis(all_f, idx_neg, axis=1)
    is_max = jnp.minimum(pos, neg) > 0.0
    thin = jnp.where(is_max, grad_mag, 0.0)
    low, high = min(threshold1, threshold2), max(threshold1, threshold2)
    th = jnp.where(thin < low, 0.0, thin)
    higher = thin > high
    th = jnp.where(higher, 1.0, th)
    connect = conv(higher.astype(jnp.float32), cf, 1, 1)
    middle = (thin >= low) & (thin <= high)
    th = jnp.where(middle, 0.0, th)
    connect = jnp.where(middle, connect, 0.0)
    th = jnp.where(connect > 0.0, 1.0, th)
    th = th.at[..., 0, :].set(0.0).at[..., -1, :].set(0.0)
    th = th.at[..., :, 0].set(0.0).at[..., :, -1].set(0.0)
    return (th > 0.0).astype(jnp.float32)


if __name__ == "__main__":
    weights = make_weights(filter_size=5, std=1.0)

    # Single-tile path (small shape consistent with the module: B=2, C=3, 16x16).
    key = jax.random.PRNGKey(0)
    B, C, H, W = 2, 3, 16, 16
    img = jax.random.uniform(key, (B, C, H, W), dtype=jnp.float32) * 255.0
    out = jax.block_until_ready(canny_pallas(img, weights))
    assert out.shape == (B, 1, H, W) and out.dtype == jnp.float32
    ref = jax.block_until_ready(canny_reference(img, weights))
    mismatch = int(jnp.sum(jnp.abs(out - ref)))
    # Binary output; tolerate a few pixels flipping due to f32 accumulation-order
    # differences (shift-add vs conv) near the 10/100 decision thresholds.
    assert mismatch <= max(2, int(0.01 * out.size)), f"mismatch={mismatch}"

    # Multi-tile path: 3 row tiles of 8 rows, exercising the halo fetch, clamped halo
    # indices at the top/bottom image edges and the per-tile masking end-to-end.
    img2 = jax.random.uniform(jax.random.PRNGKey(0), (1, 3, 24, 16), dtype=jnp.float32) * 255.0
    out2 = jax.block_until_ready(canny_pallas(img2, weights, tile_rows=8))
    ref2 = jax.block_until_ready(canny_reference(img2, weights))
    mismatch2 = int(jnp.sum(jnp.abs(out2 - ref2)))
    assert mismatch2 <= max(2, int(0.01 * out2.size)), f"mismatch2={mismatch2}"

    print("KERNEL_OK")
</pallas_src>

<mosaic_0001>
module attributes {stable_mosaic.version = 11 : i64} {
  func.func @kernel(%arg0: i32, %arg1: i32, %arg2: memref<1x3x8x16xf32, #tpu.memory_space<vmem>>, %arg3: memref<1x3x16x16xf32, #tpu.memory_space<vmem>>, %arg4: memref<1x3x8x16xf32, #tpu.memory_space<vmem>>, %arg5: memref<1x1x16x16xf32, #tpu.memory_space<vmem>>, %arg6: memref<32x128xf32, #tpu.memory_space<vmem>>) attributes {dimension_semantics = [#tpu.dimension_semantics<parallel>, #tpu.dimension_semantics<parallel>], iteration_bounds = array<i64: 2, 1>, scalar_prefetch = 0 : i64, scratch_operands = 1 : i64, tpu.core_type = #tpu.core_type<tc>, window_params = [{transform_indices = @transform_0, window_bounds = array<i64: 1, 3, 8, 16>}, {transform_indices = @transform_1, window_bounds = array<i64: 1, 3, 16, 16>}, {transform_indices = @transform_2, window_bounds = array<i64: 1, 3, 8, 16>}, {transform_indices = @transform_3, window_bounds = array<i64: 1, 1, 16, 16>}]} {
    %c16_i32 = arith.constant 16 : i32
    %0 = arith.muli %arg1, %c16_i32 : i32
    %1 = tpu.iota {dimensions = array<i32: 0>} : vector<32x128xi32>
    %2 = tpu.iota {dimensions = array<i32: 1>} : vector<32x128xi32>
    %c8_i32 = arith.constant 8 : i32
    %3 = arith.subi %0, %c8_i32 : i32
    %4 = vector.broadcast %3 : i32 to vector<32x128xi32>
    %5 = arith.addi %1, %4 : vector<32x128xi32>
    %c0_i32 = arith.constant 0 : i32
    %6 = vector.broadcast %c0_i32 : i32 to vector<32x128xi32>
    %7 = arith.cmpi sge, %5, %6 : vector<32x128xi32>
    %c16_i32_0 = arith.constant 16 : i32
    %8 = vector.broadcast %c16_i32_0 : i32 to vector<32x128xi32>
    %9 = arith.cmpi slt, %5, %8 : vector<32x128xi32>
    %10 = arith.andi %7, %9 : vector<32x128xi1>
    %c16_i32_1 = arith.constant 16 : i32
    %11 = vector.broadcast %c16_i32_1 : i32 to vector<32x128xi32>
    %12 = arith.cmpi slt, %2, %11 : vector<32x128xi32>
    %13 = arith.andi %10, %12 : vector<32x128xi1>
    %cst = arith.constant 0.000000e+00 : f32
    %14 = vector.broadcast %cst : f32 to vector<32x128xf32>
    %cst_2 = arith.constant 0.000000e+00 : f32
    %15 = vector.broadcast %cst_2 : f32 to vector<32x128xf32>
    %cst_3 = arith.constant 0.000000e+00 : f32
    %16 = vector.broadcast %cst_3 : f32 to vector<32x128xf32>
    %c0 = arith.constant 0 : index
    %c0_4 = arith.constant 0 : index
    %c0_5 = arith.constant 0 : index
    %c0_6 = arith.constant 0 : index
    %17 = vector.load %arg2[%c0, %c0_4, %c0_5, %c0_6] : memref<1x3x8x16xf32, #tpu.memory_space<vmem>>, vector<1x1x8x16xf32>
    %18 = vector.shape_cast %17 : vector<1x1x8x16xf32> to vector<8x16xf32>
    %c0_7 = arith.constant 0 : index
    %c0_8 = arith.constant 0 : index
    %19 = vector.load %arg6[%c0_7, %c0_8] : memref<32x128xf32, #tpu.memory_space<vmem>>, vector<8x16xf32>
    tpu.vector_store %arg6[%c0_7, %c0_8], %18 {strides = array<i32>} : memref<32x128xf32, #tpu.memory_space<vmem>>, vector<8x16xf32>,
    %c0_9 = arith.constant 0 : index
    %c0_10 = arith.constant 0 : index
    %c0_11 = arith.constant 0 : index
    %c0_12 = arith.constant 0 : index
    %20 = vector.load %arg3[%c0_9, %c0_10, %c0_11, %c0_12] : memref<1x3x16x16xf32, #tpu.memory_space<vmem>>, vector<1x1x16x16xf32>
    %21 = vector.shape_cast %20 : vector<1x1x16x16xf32> to vector<16x16xf32>
    %c8 = arith.constant 8 : index
    %c0_13 = arith.constant 0 : index
    %22 = vector.load %arg6[%c8, %c0_13] : memref<32x128xf32, #tpu.memory_space<vmem>>, vector<16x16xf32>
    tpu.vector_store %arg6[%c8, %c0_13], %21 {strides = array<i32>} : memref<32x128xf32, #tpu.memory_space<vmem>>, vector<16x16xf32>,
    %c0_14 = arith.constant 0 : index
    %c0_15 = arith.constant 0 : index
    %c0_16 = arith.constant 0 : index
    %c0_17 = arith.constant 0 : index
    %23 = vector.load %arg4[%c0_14, %c0_15, %c0_16, %c0_17] : memref<1x3x8x16xf32, #tpu.memory_space<vmem>>, vector<1x1x8x16xf32>
    %24 = vector.shape_cast %23 : vector<1x1x8x16xf32> to vector<8x16xf32>
    %c24 = arith.constant 24 : index
    %c0_18 = arith.constant 0 : index
    %25 = vector.load %arg6[%c24, %c0_18] : memref<32x128xf32, #tpu.memory_space<vmem>>, vector<8x16xf32>
    tpu.vector_store %arg6[%c24, %c0_18], %24 {strides = array<i32>} : memref<32x128xf32, #tpu.memory_space<vmem>>, vector<8x16xf32>,
    %c0_19 = arith.constant 0 : index
    %c0_20 = arith.constant 0 : index
    %26 = vector.load %arg6[%c0_19, %c0_20] : memref<32x128xf32, #tpu.memory_space<vmem>>, vector<32x128xf32>
    %cst_21 = arith.constant 0.000000e+00 : f32
    %27 = vector.broadcast %cst_21 : f32 to vector<32x128xf32>
    %28 = arith.select %13, %26, %27 : vector<32x128xi1>, vector<32x128xf32>
    %cst_22 = arith.constant 1.000000e+00 : f32
    %29 = vector.broadcast %cst_22 : f32 to vector<32x128xf32>
    %30 = arith.mulf %29, %28 : vector<32x128xf32>
    %c1_i32 = arith.constant 1 : i32
    %31 = tpu.dynamic_rotate %28 by %c1_i32 dim 1 : vector<32x128xf32>, i32 -> vector<32x128xf32>
    %c127_i32 = arith.constant 127 : i32
    %32 = tpu.dynamic_rotate %28 by %c127_i32 dim 1 : vector<32x128xf32>, i32 -> vector<32x128xf32>
    %33 = arith.addf %31, %32 : vector<32x128xf32>
    %cst_23 = arith.constant 0.606530666 : f32
    %34 = vector.broadcast %cst_23 : f32 to vector<32x128xf32>
    %35 = arith.mulf %34, %33 : vector<32x128xf32>
    %36 = arith.addf %30, %35 : vector<32x128xf32>
    %c2_i32 = arith.constant 2 : i32
    %37 = tpu.dynamic_rotate %28 by %c2_i32 dim 1 : vector<32x128xf32>, i32 -> vector<32x128xf32>
    %c126_i32 = arith.constant 126 : i32
    %38 = tpu.dynamic_rotate %28 by %c126_i32 dim 1 : vector<32x128xf32>, i32 -> vector<32x128xf32>
    %39 = arith.addf %37, %38 : vector<32x128xf32>
    %cst_24 = arith.constant 0.135335281 : f32
    %40 = vector.broadcast %cst_24 : f32 to vector<32x128xf32>
    %41 = arith.mulf %40, %39 : vector<32x128xf32>
    %42 = arith.addf %36, %41 : vector<32x128xf32>
    %cst_25 = arith.constant 1.000000e+00 : f32
    %43 = vector.broadcast %cst_25 : f32 to vector<32x128xf32>
    %44 = arith.mulf %43, %42 : vector<32x128xf32>
    %c1_i32_26 = arith.constant 1 : i32
    %45 = tpu.dynamic_rotate %42 by %c1_i32_26 dim 0 : vector<32x128xf32>, i32 -> vector<32x128xf32>
    %c31_i32 = arith.constant 31 : i32
    %46 = tpu.dynamic_rotate %42 by %c31_i32 dim 0 : vector<32x128xf32>, i32 -> vector<32x128xf32>
    %47 = arith.addf %45, %46 : vector<32x128xf32>
    %cst_27 = arith.constant 0.606530666 : f32
    %48 = vector.broadcast %cst_27 : f32 to vector<32x128xf32>
    %49 = arith.mulf %48, %47 : vector<32x128xf32>
    %50 = arith.addf %44, %49 : vector<32x128xf32>
    %c2_i32_28 = arith.constant 2 : i32
    %51 = tpu.dynamic_rotate %42 by %c2_i32_28 dim 0 : vector<32x128xf32>, i32 -> vector<32x128xf32>
    %c30_i32 = arith.constant 30 : i32
    %52 = tpu.dynamic_rotate %42 by %c30_i32 dim 0 : vector<32x128xf32>, i32 -> vector<32x128xf32>
    %53 = arith.addf %51, %52 : vector<32x128xf32>
    %cst_29 = arith.constant 0.135335281 : f32
    %54 = vector.broadcast %cst_29 : f32 to vector<32x128xf32>
    %55 = arith.mulf %54, %53 : vector<32x128xf32>
    %56 = arith.addf %50, %55 : vector<32x128xf32>
    %cst_30 = arith.constant 0.000000e+00 : f32
    %57 = vector.broadcast %cst_30 : f32 to vector<32x128xf32>
    %58 = arith.select %13, %56, %57 : vector<32x128xi1>, vector<32x128xf32>
    %c1_i32_31 = arith.constant 1 : i32
    %59 = tpu.dynamic_rotate %58 by %c1_i32_31 dim 0 : vector<32x128xf32>, i32 -> vector<32x128xf32>
    %cst_32 = arith.constant 2.000000e+00 : f32
    %60 = vector.broadcast %cst_32 : f32 to vector<32x128xf32>
    %61 = arith.mulf %60, %58 : vector<32x128xf32>
    %62 = arith.addf %59, %61 : vector<32x128xf32>
    %c31_i32_33 = arith.constant 31 : i32
    %63 = tpu.dynamic_rotate %58 by %c31_i32_33 dim 0 : vector<32x128xf32>, i32 -> vector<32x128xf32>
    %64 = arith.addf %62, %63 : vector<32x128xf32>
    %c1_i32_34 = arith.constant 1 : i32
    %65 = tpu.dynamic_rotate %58 by %c1_i32_34 dim 1 : vector<32x128xf32>, i32 -> vector<32x128xf32>
    %cst_35 = arith.constant 2.000000e+00 : f32
    %66 = vector.broadcast %cst_35 : f32 to vector<32x128xf32>
    %67 = arith.mulf %66, %58 : vector<32x128xf32>
    %68 = arith.addf %65, %67 : vector<32x128xf32>
    %c127_i32_36 = arith.constant 127 : i32
    %69 = tpu.dynamic_rotate %58 by %c127_i32_36 dim 1 : vector<32x128xf32>, i32 -> vector<32x128xf32>
    %70 = arith.addf %68, %69 : vector<32x128xf32>
    %c1_i32_37 = arith.constant 1 : i32
    %71 = tpu.dynamic_rotate %64 by %c1_i32_37 dim 1 : vector<32x128xf32>, i32 -> vector<32x128xf32>
    %c127_i32_38 = arith.constant 127 : i32
    %72 = tpu.dynamic_rotate %64 by %c127_i32_38 dim 1 : vector<32x128xf32>, i32 -> vector<32x128xf32>
    %73 = arith.subf %71, %72 : vector<32x128xf32>
    %c1_i32_39 = arith.constant 1 : i32
    %74 = tpu.dynamic_rotate %70 by %c1_i32_39 dim 0 : vector<32x128xf32>, i32 -> vector<32x128xf32>
    %c31_i32_40 = arith.constant 31 : i32
    %75 = tpu.dynamic_rotate %70 by %c31_i32_40 dim 0 : vector<32x128xf32>, i32 -> vector<32x128xf32>
    %76 = arith.subf %74, %75 : vector<32x128xf32>
    %77 = arith.mulf %73, %73 : vector<32x128xf32>
    %78 = arith.mulf %76, %76 : vector<32x128xf32>
    %79 = arith.addf %77, %78 : vector<32x128xf32>
    %80 = math.sqrt %79 : vector<32x128xf32>
    %81 = arith.addf %14, %80 : vector<32x128xf32>
    %82 = arith.addf %15, %73 : vector<32x128xf32>
    %83 = arith.addf %16, %76 : vector<32x128xf32>
    %c0_41 = arith.constant 0 : index
    %c1 = arith.constant 1 : index
    %c0_42 = arith.constant 0 : index
    %c0_43 = arith.constant 0 : index
    %84 = vector.load %arg2[%c0_41, %c1, %c0_42, %c0_43] : memref<1x3x8x16xf32, #tpu.memory_space<vmem>>, vector<1x1x8x16xf32>
    %85 = vector.shape_cast %84 : vector<1x1x8x16xf32> to vector<8x16xf32>
    %c0_44 = arith.constant 0 : index
    %c0_45 = arith.constant 0 : index
    %86 = vector.load %arg6[%c0_44, %c0_45] : memref<32x128xf32, #tpu.memory_space<vmem>>, vector<8x16xf32>
    tpu.vector_store %arg6[%c0_44, %c0_45], %85 {strides = array<i32>} : memref<32x128xf32, #tpu.memory_space<vmem>>, vector<8x16xf32>,
    %c0_46 = arith.constant 0 : index
    %c1_47 = arith.constant 1 : index
    %c0_48 = arith.constant 0 : index
    %c0_49 = arith.constant 0 : index
    %87 = vector.load %arg3[%c0_46, %c1_47, %c0_48, %c0_49] : memref<1x3x16x16xf32, #tpu.memory_space<vmem>>, vector<1x1x16x16xf32>
    %88 = vector.shape_cast %87 : vector<1x1x16x16xf32> to vector<16x16xf32>
    %c8_50 = arith.constant 8 : index
    %c0_51 = arith.constant 0 : index
    %89 = vector.load %arg6[%c8_50, %c0_51] : memref<32x128xf32, #tpu.memory_space<vmem>>, vector<16x16xf32>
    tpu.vector_store %arg6[%c8_50, %c0_51], %88 {strides = array<i32>} : memref<32x128xf32, #tpu.memory_space<vmem>>, vector<16x16xf32>,
    %c0_52 = arith.constant 0 : index
    %c1_53 = arith.constant 1 : index
    %c0_54 = arith.constant 0 : index
    %c0_55 = arith.constant 0 : index
    %90 = vector.load %arg4[%c0_52, %c1_53, %c0_54, %c0_55] : memref<1x3x8x16xf32, #tpu.memory_space<vmem>>, vector<1x1x8x16xf32>
    %91 = vector.shape_cast %90 : vector<1x1x8x16xf32> to vector<8x16xf32>
    %c24_56 = arith.constant 24 : index
    %c0_57 = arith.constant 0 : index
    %92 = vector.load %arg6[%c24_56, %c0_57] : memref<32x128xf32, #tpu.memory_space<vmem>>, vector<8x16xf32>
    tpu.vector_store %arg6[%c24_56, %c0_57], %91 {strides = array<i32>} : memref<32x128xf32, #tpu.memory_space<vmem>>, vector<8x16xf32>,
    %c0_58 = arith.constant 0 : index
    %c0_59 = arith.constant 0 : index
    %93 = vector.load %arg6[%c0_58, %c0_59] : memref<32x128xf32, #tpu.memory_space<vmem>>, vector<32x128xf32>
    %cst_60 = arith.constant 0.000000e+00 : f32
    %94 = vector.broadcast %cst_60 : f32 to vector<32x128xf32>
    %95 = arith.select %13, %93, %94 : vector<32x128xi1>, vector<32x128xf32>
    %cst_61 = arith.constant 1.000000e+00 : f32
    %96 = vector.broadcast %cst_61 : f32 to vector<32x128xf32>
    %97 = arith.mulf %96, %95 : vector<32x128xf32>
    %c1_i32_62 = arith.constant 1 : i32
    %98 = tpu.dynamic_rotate %95 by %c1_i32_62 dim 1 : vector<32x128xf32>, i32 -> vector<32x128xf32>
    %c127_i32_63 = arith.constant 127 : i32
    %99 = tpu.dynamic_rotate %95 by %c127_i32_63 dim 1 : vector<32x128xf32>, i32 -> vector<32x128xf32>
    %100 = arith.addf %98, %99 : vector<32x128xf32>
    %cst_64 = arith.constant 0.606530666 : f32
    %101 = vector.broadcast %cst_64 : f32 to vector<32x128xf32>
    %102 = arith.mulf %101, %100 : vector<32x128xf32>
    %103 = arith.addf %97, %102 : vector<32x128xf32>
    %c2_i32_65 = arith.constant 2 : i32
    %104 = tpu.dynamic_rotate %95 by %c2_i32_65 dim 1 : vector<32x128xf32>, i32 -> vector<32x128xf32>
    %c126_i32_66 = arith.constant 126 : i32
    %105 = tpu.dynamic_rotate %95 by %c126_i32_66 dim 1 : vector<32x128xf32>, i32 -> vector<32x128xf32>
    %106 = arith.addf %104, %105 : vector<32x128xf32>
    %cst_67 = arith.constant 0.135335281 : f32
    %107 = vector.broadcast %cst_67 : f32 to vector<32x128xf32>
    %108 = arith.mulf %107, %106 : vector<32x128xf32>
    %109 = arith.addf %103, %108 : vector<32x128xf32>
    %cst_68 = arith.constant 1.000000e+00 : f32
    %110 = vector.broadcast %cst_68 : f32 to vector<32x128xf32>
    %111 = arith.mulf %110, %109 : vector<32x128xf32>
    %c1_i32_69 = arith.constant 1 : i32
    %112 = tpu.dynamic_rotate %109 by %c1_i32_69 dim 0 : vector<32x128xf32>, i32 -> vector<32x128xf32>
    %c31_i32_70 = arith.constant 31 : i32
    %113 = tpu.dynamic_rotate %109 by %c31_i32_70 dim 0 : vector<32x128xf32>, i32 -> vector<32x128xf32>
    %114 = arith.addf %112, %113 : vector<32x128xf32>
    %cst_71 = arith.constant 0.606530666 : f32
    %115 = vector.broadcast %cst_71 : f32 to vector<32x128xf32>
    %116 = arith.mulf %115, %114 : vector<32x128xf32>
    %117 = arith.addf %111, %116 : vector<32x128xf32>
    %c2_i32_72 = arith.constant 2 : i32
    %118 = tpu.dynamic_rotate %109 by %c2_i32_72 dim 0 : vector<32x128xf32>, i32 -> vector<32x128xf32>
    %c30_i32_73 = arith.constant 30 : i32
    %119 = tpu.dynamic_rotate %109 by %c30_i32_73 dim 0 : vector<32x128xf32>, i32 -> vector<32x128xf32>
    %120 = arith.addf %118, %119 : vector<32x128xf32>
    %cst_74 = arith.constant 0.135335281 : f32
    %121 = vector.broadcast %cst_74 : f32 to vector<32x128xf32>
    %122 = arith.mulf %121, %120 : vector<32x128xf32>
    %123 = arith.addf %117, %122 : vector<32x128xf32>
    %cst_75 = arith.constant 0.000000e+00 : f32
    %124 = vector.broadcast %cst_75 : f32 to vector<32x128xf32>
    %125 = arith.select %13, %123, %124 : vector<32x128xi1>, vector<32x128xf32>
    %c1_i32_76 = arith.constant 1 : i32
    %126 = tpu.dynamic_rotate %125 by %c1_i32_76 dim 0 : vector<32x128xf32>, i32 -> vector<32x128xf32>
    %cst_77 = arith.constant 2.000000e+00 : f32
    %127 = vector.broadcast %cst_77 : f32 to vector<32x128xf32>
    %128 = arith.mulf %127, %125 : vector<32x128xf32>
    %129 = arith.addf %126, %128 : vector<32x128xf32>
    %c31_i32_78 = arith.constant 31 : i32
    %130 = tpu.dynamic_rotate %125 by %c31_i32_78 dim 0 : vector<32x128xf32>, i32 -> vector<32x128xf32>
    %131 = arith.addf %129, %130 : vector<32x128xf32>
    %c1_i32_79 = arith.constant 1 : i32
    %132 = tpu.dynamic_rotate %125 by %c1_i32_79 dim 1 : vector<32x128xf32>, i32 -> vector<32x128xf32>
    %cst_80 = arith.constant 2.000000e+00 : f32
    %133 = vector.broadcast %cst_80 : f32 to vector<32x128xf32>
    %134 = arith.mulf %133, %125 : vector<32x128xf32>
    %135 = arith.addf %132, %134 : vector<32x128xf32>
    %c127_i32_81 = arith.constant 127 : i32
    %136 = tpu.dynamic_rotate %125 by %c127_i32_81 dim 1 : vector<32x128xf32>, i32 -> vector<32x128xf32>
    %137 = arith.addf %135, %136 : vector<32x128xf32>
    %c1_i32_82 = arith.constant 1 : i32
    %138 = tpu.dynamic_rotate %131 by %c1_i32_82 dim 1 : vector<32x128xf32>, i32 -> vector<32x128xf32>
    %c127_i32_83 = arith.constant 127 : i32
    %139 = tpu.dynamic_rotate %131 by %c127_i32_83 dim 1 : vector<32x128xf32>, i32 -> vector<32x128xf32>
    %140 = arith.subf %138, %139 : vector<32x128xf32>
    %c1_i32_84 = arith.constant 1 : i32
    %141 = tpu.dynamic_rotate %137 by %c1_i32_84 dim 0 : vector<32x128xf32>, i32 -> vector<32x128xf32>
    %c31_i32_85 = arith.constant 31 : i32
    %142 = tpu.dynamic_rotate %137 by %c31_i32_85 dim 0 : vector<32x128xf32>, i32 -> vector<32x128xf32>
    %143 = arith.subf %141, %142 : vector<32x128xf32>
    %144 = arith.mulf %140, %140 : vector<32x128xf32>
    %145 = arith.mulf %143, %143 : vector<32x128xf32>
    %146 = arith.addf %144, %145 : vector<32x128xf32>
    %147 = math.sqrt %146 : vector<32x128xf32>
    %148 = arith.addf %81, %147 : vector<32x128xf32>
    %149 = arith.addf %82, %140 : vector<32x128xf32>
    %150 = arith.addf %83, %143 : vector<32x128xf32>
    %c0_86 = arith.constant 0 : index
    %c2 = arith.constant 2 : index
    %c0_87 = arith.constant 0 : index
    %c0_88 = arith.constant 0 : index
    %151 = vector.load %arg2[%c0_86, %c2, %c0_87, %c0_88] : memref<1x3x8x16xf32, #tpu.memory_space<vmem>>, vector<1x1x8x16xf32>
    %152 = vector.shape_cast %151 : vector<1x1x8x16xf32> to vector<8x16xf32>
    %c0_89 = arith.constant 0 : index
    %c0_90 = arith.constant 0 : index
    %153 = vector.load %arg6[%c0_89, %c0_90] : memref<32x128xf32, #tpu.memory_space<vmem>>, vector<8x16xf32>
    tpu.vector_store %arg6[%c0_89, %c0_90], %152 {strides = array<i32>} : memref<32x128xf32, #tpu.memory_space<vmem>>, vector<8x16xf32>,
    %c0_91 = arith.constant 0 : index
    %c2_92 = arith.constant 2 : index
    %c0_93 = arith.constant 0 : index
    %c0_94 = arith.constant 0 : index
    %154 = vector.load %arg3[%c0_91, %c2_92, %c0_93, %c0_94] : memref<1x3x16x16xf32, #tpu.memory_space<vmem>>, vector<1x1x16x16xf32>
    %155 = vector.shape_cast %154 : vector<1x1x16x16xf32> to vector<16x16xf32>
    %c8_95 = arith.constant 8 : index
    %c0_96 = arith.constant 0 : index
    %156 = vector.load %arg6[%c8_95, %c0_96] : memref<32x128xf32, #tpu.memory_space<vmem>>, vector<16x16xf32>
    tpu.vector_store %arg6[%c8_95, %c0_96], %155 {strides = array<i32>} : memref<32x128xf32, #tpu.memory_space<vmem>>, vector<16x16xf32>,
    %c0_97 = arith.constant 0 : index
    %c2_98 = arith.constant 2 : index
    %c0_99 = arith.constant 0 : index
    %c0_100 = arith.constant 0 : index
    %157 = vector.load %arg4[%c0_97, %c2_98, %c0_99, %c0_100] : memref<1x3x8x16xf32, #tpu.memory_space<vmem>>, vector<1x1x8x16xf32>
    %158 = vector.shape_cast %157 : vector<1x1x8x16xf32> to vector<8x16xf32>
    %c24_101 = arith.constant 24 : index
    %c0_102 = arith.constant 0 : index
    %159 = vector.load %arg6[%c24_101, %c0_102] : memref<32x128xf32, #tpu.memory_space<vmem>>, vector<8x16xf32>
    tpu.vector_store %arg6[%c24_101, %c0_102], %158 {strides = array<i32>} : memref<32x128xf32, #tpu.memory_space<vmem>>, vector<8x16xf32>,
    %c0_103 = arith.constant 0 : index
    %c0_104 = arith.constant 0 : index
    %160 = vector.load %arg6[%c0_103, %c0_104] : memref<32x128xf32, #tpu.memory_space<vmem>>, vector<32x128xf32>
    %cst_105 = arith.constant 0.000000e+00 : f32
    %161 = vector.broadcast %cst_105 : f32 to vector<32x128xf32>
    %162 = arith.select %13, %160, %161 : vector<32x128xi1>, vector<32x128xf32>
    %cst_106 = arith.constant 1.000000e+00 : f32
    %163 = vector.broadcast %cst_106 : f32 to vector<32x128xf32>
    %164 = arith.mulf %163, %162 : vector<32x128xf32>
    %c1_i32_107 = arith.constant 1 : i32
    %165 = tpu.dynamic_rotate %162 by %c1_i32_107 dim 1 : vector<32x128xf32>, i32 -> vector<32x128xf32>
    %c127_i32_108 = arith.constant 127 : i32
    %166 = tpu.dynamic_rotate %162 by %c127_i32_108 dim 1 : vector<32x128xf32>, i32 -> vector<32x128xf32>
    %167 = arith.addf %165, %166 : vector<32x128xf32>
    %cst_109 = arith.constant 0.606530666 : f32
    %168 = vector.broadcast %cst_109 : f32 to vector<32x128xf32>
    %169 = arith.mulf %168, %167 : vector<32x128xf32>
    %170 = arith.addf %164, %169 : vector<32x128xf32>
    %c2_i32_110 = arith.constant 2 : i32
    %171 = tpu.dynamic_rotate %162 by %c2_i32_110 dim 1 : vector<32x128xf32>, i32 -> vector<32x128xf32>
    %c126_i32_111 = arith.constant 126 : i32
    %172 = tpu.dynamic_rotate %162 by %c126_i32_111 dim 1 : vector<32x128xf32>, i32 -> vector<32x128xf32>
    %173 = arith.addf %171, %172 : vector<32x128xf32>
    %cst_112 = arith.constant 0.135335281 : f32
    %174 = vector.broadcast %cst_112 : f32 to vector<32x128xf32>
    %175 = arith.mulf %174, %173 : vector<32x128xf32>
    %176 = arith.addf %170, %175 : vector<32x128xf32>
    %cst_113 = arith.constant 1.000000e+00 : f32
    %177 = vector.broadcast %cst_113 : f32 to vector<32x128xf32>
    %178 = arith.mulf %177, %176 : vector<32x128xf32>
    %c1_i32_114 = arith.constant 1 : i32
    %179 = tpu.dynamic_rotate %176 by %c1_i32_114 dim 0 : vector<32x128xf32>, i32 -> vector<32x128xf32>
    %c31_i32_115 = arith.constant 31 : i32
    %180 = tpu.dynamic_rotate %176 by %c31_i32_115 dim 0 : vector<32x128xf32>, i32 -> vector<32x128xf32>
    %181 = arith.addf %179, %180 : vector<32x128xf32>
    %cst_116 = arith.constant 0.606530666 : f32
    %182 = vector.broadcast %cst_116 : f32 to vector<32x128xf32>
    %183 = arith.mulf %182, %181 : vector<32x128xf32>
    %184 = arith.addf %178, %183 : vector<32x128xf32>
    %c2_i32_117 = arith.constant 2 : i32
    %185 = tpu.dynamic_rotate %176 by %c2_i32_117 dim 0 : vector<32x128xf32>, i32 -> vector<32x128xf32>
    %c30_i32_118 = arith.constant 30 : i32
    %186 = tpu.dynamic_rotate %176 by %c30_i32_118 dim 0 : vector<32x128xf32>, i32 -> vector<32x128xf32>
    %187 = arith.addf %185, %186 : vector<32x128xf32>
    %cst_119 = arith.constant 0.135335281 : f32
    %188 = vector.broadcast %cst_119 : f32 to vector<32x128xf32>
    %189 = arith.mulf %188, %187 : vector<32x128xf32>
    %190 = arith.addf %184, %189 : vector<32x128xf32>
    %cst_120 = arith.constant 0.000000e+00 : f32
    %191 = vector.broadcast %cst_120 : f32 to vector<32x128xf32>
    %192 = arith.select %13, %190, %191 : vector<32x128xi1>, vector<32x128xf32>
    %c1_i32_121 = arith.constant 1 : i32
    %193 = tpu.dynamic_rotate %192 by %c1_i32_121 dim 0 : vector<32x128xf32>, i32 -> vector<32x128xf32>
    %cst_122 = arith.constant 2.000000e+00 : f32
    %194 = vector.broadcast %cst_122 : f32 to vector<32x128xf32>
    %195 = arith.mulf %194, %192 : vector<32x128xf32>
    %196 = arith.addf %193, %195 : vector<32x128xf32>
    %c31_i32_123 = arith.constant 31 : i32
    %197 = tpu.dynamic_rotate %192 by %c31_i32_123 dim 0 : vector<32x128xf32>, i32 -> vector<32x128xf32>
    %198 = arith.addf %196, %197 : vector<32x128xf32>
    %c1_i32_124 = arith.constant 1 : i32
    %199 = tpu.dynamic_rotate %192 by %c1_i32_124 dim 1 : vector<32x128xf32>, i32 -> vector<32x128xf32>
    %cst_125 = arith.constant 2.000000e+00 : f32
    %200 = vector.broadcast %cst_125 : f32 to vector<32x128xf32>
    %201 = arith.mulf %200, %192 : vector<32x128xf32>
    %202 = arith.addf %199, %201 : vector<32x128xf32>
    %c127_i32_126 = arith.constant 127 : i32
    %203 = tpu.dynamic_rotate %192 by %c127_i32_126 dim 1 : vector<32x128xf32>, i32 -> vector<32x128xf32>
    %204 = arith.addf %202, %203 : vector<32x128xf32>
    %c1_i32_127 = arith.constant 1 : i32
    %205 = tpu.dynamic_rotate %198 by %c1_i32_127 dim 1 : vector<32x128xf32>, i32 -> vector<32x128xf32>
    %c127_i32_128 = arith.constant 127 : i32
    %206 = tpu.dynamic_rotate %198 by %c127_i32_128 dim 1 : vector<32x128xf32>, i32 -> vector<32x128xf32>
    %207 = arith.subf %205, %206 : vector<32x128xf32>
    %c1_i32_129 = arith.constant 1 : i32
    %208 = tpu.dynamic_rotate %204 by %c1_i32_129 dim 0 : vector<32x128xf32>, i32 -> vector<32x128xf32>
    %c31_i32_130 = arith.constant 31 : i32
    %209 = tpu.dynamic_rotate %204 by %c31_i32_130 dim 0 : vector<32x128xf32>, i32 -> vector<32x128xf32>
    %210 = arith.subf %208, %209 : vector<32x128xf32>
    %211 = arith.mulf %207, %207 : vector<32x128xf32>
    %212 = arith.mulf %210, %210 : vector<32x128xf32>
    %213 = arith.addf %211, %212 : vector<32x128xf32>
    %214 = math.sqrt %213 : vector<32x128xf32>
    %215 = arith.addf %148, %214 : vector<32x128xf32>
    %216 = arith.addf %149, %207 : vector<32x128xf32>
    %217 = arith.addf %150, %210 : vector<32x128xf32>
    %cst_131 = arith.constant 0.000000e+00 : f32
    %218 = vector.broadcast %cst_131 : f32 to vector<32x128xf32>
    %219 = arith.select %13, %215, %218 : vector<32x128xi1>, vector<32x128xf32>
    %c127_i32_132 = arith.constant 127 : i32
    %220 = tpu.dynamic_rotate %219 by %c127_i32_132 dim 1 : vector<32x128xf32>, i32 -> vector<32x128xf32>
    %c1_i32_133 = arith.constant 1 : i32
    %221 = tpu.dynamic_rotate %219 by %c1_i32_133 dim 1 : vector<32x128xf32>, i32 -> vector<32x128xf32>
    %222 = arith.maximumf %220, %221 : vector<32x128xf32>
    %c31_i32_134 = arith.constant 31 : i32
    %223 = tpu.dynamic_rotate %219 by %c31_i32_134 dim 0 : vector<32x128xf32>, i32 -> vector<32x128xf32>
    %c1_i32_135 = arith.constant 1 : i32
    %224 = tpu.dynamic_rotate %219 by %c1_i32_135 dim 0 : vector<32x128xf32>, i32 -> vector<32x128xf32>
    %225 = arith.maximumf %223, %224 : vector<32x128xf32>
    %c127_i32_136 = arith.constant 127 : i32
    %226 = tpu.dynamic_rotate %223 by %c127_i32_136 dim 1 : vector<32x128xf32>, i32 -> vector<32x128xf32>
    %c1_i32_137 = arith.constant 1 : i32
    %227 = tpu.dynamic_rotate %224 by %c1_i32_137 dim 1 : vector<32x128xf32>, i32 -> vector<32x128xf32>
    %228 = arith.maximumf %226, %227 : vector<32x128xf32>
    %c1_i32_138 = arith.constant 1 : i32
    %229 = tpu.dynamic_rotate %223 by %c1_i32_138 dim 1 : vector<32x128xf32>, i32 -> vector<32x128xf32>
    %c127_i32_139 = arith.constant 127 : i32
    %230 = tpu.dynamic_rotate %224 by %c127_i32_139 dim 1 : vector<32x128xf32>, i32 -> vector<32x128xf32>
    %231 = arith.maximumf %229, %230 : vector<32x128xf32>
    %232 = math.absf %216 : vector<32x128xf32>
    %233 = math.absf %217 : vector<32x128xf32>
    %cst_140 = arith.constant 0.414213568 : f32
    %234 = vector.broadcast %cst_140 : f32 to vector<32x128xf32>
    %235 = arith.mulf %234, %232 : vector<32x128xf32>
    %236 = arith.cmpf olt, %233, %235 : vector<32x128xf32>
    %cst_141 = arith.constant 0.414213568 : f32
    %237 = vector.broadcast %cst_141 : f32 to vector<32x128xf32>
    %238 = arith.mulf %237, %233 : vector<32x128xf32>
    %239 = arith.cmpf olt, %232, %238 : vector<32x128xf32>
    %cst_142 = arith.constant 0.000000e+00 : f32
    %240 = vector.broadcast %cst_142 : f32 to vector<32x128xf32>
    %241 = arith.cmpf oeq, %216, %240 : vector<32x128xf32>
    %cst_143 = arith.constant 0.000000e+00 : f32
    %242 = vector.broadcast %cst_143 : f32 to vector<32x128xf32>
    %243 = arith.cmpf oeq, %217, %242 : vector<32x128xf32>
    %244 = arith.andi %241, %243 : vector<32x128xi1>
    %cst_144 = arith.constant 0.000000e+00 : f32
    %245 = vector.broadcast %cst_144 : f32 to vector<32x128xf32>
    %246 = arith.cmpf oge, %216, %245 : vector<32x128xf32>
    %cst_145 = arith.constant 0.000000e+00 : f32
    %247 = vector.broadcast %cst_145 : f32 to vector<32x128xf32>
    %248 = arith.cmpf oge, %217, %247 : vector<32x128xf32>
    %249 = arith.xori %246, %248 : vector<32x128xi1>
    %cst_146 = arith.constant dense<true> : vector<32x128xi1>
    %250 = arith.xori %249, %cst_146 : vector<32x128xi1>
    %251 = arith.select %250, %228, %231 : vector<32x128xi1>, vector<32x128xf32>
    %252 = arith.select %239, %225, %251 : vector<32x128xi1>, vector<32x128xf32>
    %253 = arith.ori %236, %244 : vector<32x128xi1>
    %254 = arith.select %253, %222, %252 : vector<32x128xi1>, vector<32x128xf32>
    %255 = arith.cmpf ogt, %219, %254 : vector<32x128xf32>
    %cst_147 = arith.constant 0.000000e+00 : f32
    %256 = vector.broadcast %cst_147 : f32 to vector<32x128xf32>
    %257 = arith.select %255, %219, %256 : vector<32x128xi1>, vector<32x128xf32>
    %cst_148 = arith.constant 1.000000e+01 : f32
    %258 = vector.broadcast %cst_148 : f32 to vector<32x128xf32>
    %259 = arith.cmpf olt, %257, %258 : vector<32x128xf32>
    %cst_149 = arith.constant 0.000000e+00 : f32
    %260 = vector.broadcast %cst_149 : f32 to vector<32x128xf32>
    %261 = arith.select %259, %260, %257 : vector<32x128xi1>, vector<32x128xf32>
    %cst_150 = arith.constant 1.000000e+02 : f32
    %262 = vector.broadcast %cst_150 : f32 to vector<32x128xf32>
    %263 = arith.cmpf ogt, %257, %262 : vector<32x128xf32>
    %cst_151 = arith.constant 1.000000e+00 : f32
    %264 = vector.broadcast %cst_151 : f32 to vector<32x128xf32>
    %265 = arith.select %263, %264, %261 : vector<32x128xi1>, vector<32x128xf32>
    %266 = arith.extui %263 : vector<32x128xi1> to vector<32x128xi32>
    %267 = arith.sitofp %266 : vector<32x128xi32> to vector<32x128xf32>
    %c1_i32_152 = arith.constant 1 : i32
    %268 = tpu.dynamic_rotate %267 by %c1_i32_152 dim 0 : vector<32x128xf32>, i32 -> vector<32x128xf32>
    %269 = arith.addf %268, %267 : vector<32x128xf32>
    %c31_i32_153 = arith.constant 31 : i32
    %270 = tpu.dynamic_rotate %267 by %c31_i32_153 dim 0 : vector<32x128xf32>, i32 -> vector<32x128xf32>
    %271 = arith.addf %269, %270 : vector<32x128xf32>
    %c1_i32_154 = arith.constant 1 : i32
    %272 = tpu.dynamic_rotate %271 by %c1_i32_154 dim 1 : vector<32x128xf32>, i32 -> vector<32x128xf32>
    %273 = arith.addf %272, %271 : vector<32x128xf32>
    %c127_i32_155 = arith.constant 127 : i32
    %274 = tpu.dynamic_rotate %271 by %c127_i32_155 dim 1 : vector<32x128xf32>, i32 -> vector<32x128xf32>
    %275 = arith.addf %273, %274 : vector<32x128xf32>
    %276 = arith.subf %275, %267 : vector<32x128xf32>
    %cst_156 = arith.constant 1.000000e+01 : f32
    %277 = vector.broadcast %cst_156 : f32 to vector<32x128xf32>
    %278 = arith.cmpf oge, %257, %277 : vector<32x128xf32>
    %cst_157 = arith.constant 1.000000e+02 : f32
    %279 = vector.broadcast %cst_157 : f32 to vector<32x128xf32>
    %280 = arith.cmpf ole, %257, %279 : vector<32x128xf32>
    %281 = arith.andi %278, %280 : vector<32x128xi1>
    %cst_158 = arith.constant 0.000000e+00 : f32
    %282 = vector.broadcast %cst_158 : f32 to vector<32x128xf32>
    %283 = arith.select %281, %282, %265 : vector<32x128xi1>, vector<32x128xf32>
    %cst_159 = arith.constant 0.000000e+00 : f32
    %284 = vector.broadcast %cst_159 : f32 to vector<32x128xf32>
    %285 = arith.select %281, %276, %284 : vector<32x128xi1>, vector<32x128xf32>
    %cst_160 = arith.constant 0.000000e+00 : f32
    %286 = vector.broadcast %cst_160 : f32 to vector<32x128xf32>
    %287 = arith.cmpf ogt, %285, %286 : vector<32x128xf32>
    %cst_161 = arith.constant 1.000000e+00 : f32
    %288 = vector.broadcast %cst_161 : f32 to vector<32x128xf32>
    %289 = arith.select %287, %288, %283 : vector<32x128xi1>, vector<32x128xf32>
    %290 = tpu.iota {dimensions = array<i32: 0>} : vector<32x128xi32>
    %291 = tpu.iota {dimensions = array<i32: 1>} : vector<32x128xi32>
    %c8_i32_162 = arith.constant 8 : i32
    %292 = arith.subi %0, %c8_i32_162 : i32
    %293 = vector.broadcast %292 : i32 to vector<32x128xi32>
    %294 = arith.addi %290, %293 : vector<32x128xi32>
    %c0_i32_163 = arith.constant 0 : i32
    %295 = vector.broadcast %c0_i32_163 : i32 to vector<32x128xi32>
    %296 = arith.cmpi eq, %294, %295 : vector<32x128xi32>
    %c15_i32 = arith.constant 15 : i32
    %297 = vector.broadcast %c15_i32 : i32 to vector<32x128xi32>
    %298 = arith.cmpi eq, %294, %297 : vector<32x128xi32>
    %299 = arith.ori %296, %298 : vector<32x128xi1>
    %c0_i32_164 = arith.constant 0 : i32
    %300 = vector.broadcast %c0_i32_164 : i32 to vector<32x128xi32>
    %301 = arith.cmpi eq, %291, %300 : vector<32x128xi32>
    %302 = arith.ori %299, %301 : vector<32x128xi1>
    %c15_i32_165 = arith.constant 15 : i32
    %303 = vector.broadcast %c15_i32_165 : i32 to vector<32x128xi32>
    %304 = arith.cmpi eq, %291, %303 : vector<32x128xi32>
    %305 = arith.ori %302, %304 : vector<32x128xi1>
    %cst_166 = arith.constant 0.000000e+00 : f32
    %306 = vector.broadcast %cst_166 : f32 to vector<32x128xf32>
    %307 = arith.select %305, %306, %289 : vector<32x128xi1>, vector<32x128xf32>
    %308 = vector.extract_strided_slice %307 {offsets = [8, 0], sizes = [16, 16], strides = [1, 1]} : vector<32x128xf32> to vector<16x16xf32>
    %cst_167 = arith.constant 0.000000e+00 : f32
    %309 = vector.broadcast %cst_167 : f32 to vector<16x16xf32>
    %310 = arith.cmpf ogt, %308, %309 : vector<16x16xf32>
    %311 = arith.extui %310 : vector<16x16xi1> to vector<16x16xi32>
    %312 = arith.sitofp %311 : vector<16x16xi32> to vector<16x16xf32>
    %c0_168 = arith.constant 0 : index
    %c0_169 = arith.constant 0 : index
    %c0_170 = arith.constant 0 : index
    %c0_171 = arith.constant 0 : index
    %313 = vector.load %arg5[%c0_168, %c0_169, %c0_170, %c0_171] : memref<1x1x16x16xf32, #tpu.memory_space<vmem>>, vector<1x1x16x16xf32>
    %314 = vector.shape_cast %313 : vector<1x1x16x16xf32> to vector<16x16xf32>
    %315 = vector.shape_cast %312 : vector<16x16xf32> to vector<1x1x16x16xf32>
    tpu.vector_store %arg5[%c0_168, %c0_169, %c0_170, %c0_171], %315 {strides = array<i32>} : memref<1x1x16x16xf32, #tpu.memory_space<vmem>>, vector<1x1x16x16xf32>,
    return
  }
  func.func @transform_0(%arg0: i32, %arg1: i32) -> (i32, i32, i32, i32) {
    %c2_i32 = arith.constant 2 : i32
    %0 = arith.muli %arg1, %c2_i32 : i32
    %c1_i32 = arith.constant 1 : i32
    %1 = arith.subi %0, %c1_i32 : i32
    %c0_i32 = arith.constant 0 : i32
    %2 = arith.maxsi %1, %c0_i32 : i32
    %c0_i32_0 = arith.constant 0 : i32
    %c0_i32_1 = arith.constant 0 : i32
    %c0_i32_2 = arith.constant 0 : i32
    return %arg0, %c0_i32_0, %2, %c0_i32_1 : i32, i32, i32, i32
  }
  func.func @transform_1(%arg0: i32, %arg1: i32) -> (i32, i32, i32, i32) {
    %c0_i32 = arith.constant 0 : i32
    %c0_i32_0 = arith.constant 0 : i32
    %c0_i32_1 = arith.constant 0 : i32
    return %arg0, %c0_i32, %arg1, %c0_i32_0 : i32, i32, i32, i32
  }
  func.func @transform_2(%arg0: i32, %arg1: i32) -> (i32, i32, i32, i32) {
    %c2_i32 = arith.constant 2 : i32
    %0 = arith.muli %arg1, %c2_i32 : i32
    %c2_i32_0 = arith.constant 2 : i32
    %1 = arith.addi %0, %c2_i32_0 : i32
    %c1_i32 = arith.constant 1 : i32
    %2 = arith.minsi %1, %c1_i32 : i32
    %c0_i32 = arith.constant 0 : i32
    %c0_i32_1 = arith.constant 0 : i32
    %c0_i32_2 = arith.constant 0 : i32
    return %arg0, %c0_i32, %2, %c0_i32_1 : i32, i32, i32, i32
  }
  func.func @transform_3(%arg0: i32, %arg1: i32) -> (i32, i32, i32, i32) {
    %c0_i32 = arith.constant 0 : i32
    %c0_i32_0 = arith.constant 0 : i32
    %c0_i32_1 = arith.constant 0 : i32
    return %arg0, %c0_i32, %arg1, %c0_i32_0 : i32, i32, i32, i32
  }
}

</mosaic_0001>

<bundles_post_ra>
// kernel: tpu_custom_call.1
= control target key start
LH: loop header
LB: loop body
LE: loop exit
PB: predicated region body
PF: predicated region fallthrough
CT: control target
= control target key end

     0   :  { %s2818_s0 = inlined_call_operand.hbm [shape: f32[2,3,16,16], index: 0, kind: input, shape index: {}]   ;;  %s2819_s1 = inlined_call_operand.hbm [shape: f32[2,3,16,16], index: 1, kind: input, shape index: {}]   ;;  %s2820_s2 = inlined_call_operand.hbm [shape: f32[2,3,16,16], index: 2, kind: input, shape index: {}]   ;;  %s2821_s3 = inlined_call_operand.hbm [shape: f32[2,1,16,16], index: 3, kind: output, shape index: {}]  }
   0x1   :  { %2829 = sst [smem:[#allocation18_spill]] %s2819_s1 }
   0x2   :  { %8 = vsyncpa [#allocation4], 0 }
   0x3   :  { %10 = vsyncpa [#allocation4 + $0x1], 0 }
   0x4   :  { %11 = vsyncpa [#allocation7], 0 }
   0x5   :  { %13 = vsyncpa [#allocation7 + $0x1], 0 }
   0x6   :  { %14 = vsyncpa [#allocation5], 0 }
   0x7   :  { %16 = vsyncpa [#allocation5 + $0x1], 0  ;;  %s2088_s12 = smov 0   ;;  %s2090_s13 = smov 0  }
   0x8   :  { %s2092_s14 = smov 0   ;;  %s2094_s15 = smov 0  }
   0x9   :  { %s2096_s16 = smov 0   ;;  %s2098_s17 = smov 0  }
   0xa LB: > { %2830 = sst [smem:[#allocation13_spill]] %s2043_s14  ;;  %s2119_s18 = sadd.s32 4294967295, %s2055_s17   ;;  %s2055_s17 = sphi %s2098_s17, %s22_s17   ;;  %s2051_s16 = sphi %s2096_s16, %s2874_s16   ;;  %s2047_s15 = sphi %s2094_s15, %s2873_s15   ;;  %s2043_s14 = sphi %s2092_s14, %s2872_s14   ;;  %s2039_s13 = sphi %s2090_s13, %s2876_s13   ;;  %s2035_s12 = sphi %s2088_s12, %s2875_s12  }
   0xb   : > { %2831 = sst [smem:[#allocation14_spill]] %s2051_s16  ;;  %s1655_s19 = sadd.s32 4294967294, %s2055_s17  }
   0xc   : > { %2832 = sst [smem:[#allocation15_spill]] %s2055_s17  ;;  %s34_s20 = sadd.s32 1, %s2051_s16 }
   0xd   : > { %s51_s21 = sadd.s32 1, %s2043_s14  ;;  %p36_p0 = scmp.ge.s32.totalorder %s34_s20, 2 }
   0xe   : > { %p58_p1 = scmp.ne.s32.totalorder %s2043_s14, %s2039_s13  ;;  %p59_p2 = scmp.eq.s32.totalorder %s2055_s17, 0 }
   0xf   : > { %p64_p3 = scmp.ne.s32.totalorder %s2039_s13, %s2035_s12  ;;  %s2878_s20 = smov (%p36_p0, %s34_s20), 0 }
  0x10   : > { %2833 = sst [smem:[#allocation16_spill]] %s2878_s20  ;;  %p2131_p4 = por %p59_p2, %p58_p1 }
  0x11   : > { %p65_p5 = scmp.eq.s32.totalorder %s2119_s18, 0  ;;  %s46_s23 = ssub.s32 %s2051_s16, %s2878_s20 }
  0x12   : > { %p154_p6 = scmp.eq.s32.totalorder %s2119_s18, 1  ;;  %p49_p7 = scmp.eq.s32.totalorder %s46_s23, 0 }
  0x13   : > { %p2139_p8 = por %p65_p5, %p64_p3  ;;  %p160_p10 = scmp.eq.s32.totalorder %s1655_s19, 1 }
  0x14   : > { %p2143_p9 = por %p154_p6, %p58_p1  ;;  %p1657_p12 = scmp.ge.s32.totalorder %s2055_s17, 2 }
  0x15   : > { %s2148_s26 = scalar_select %p49_p7, %s2043_s14, %s51_s21  }
  0x16   : > { %p2150_p11 = por %p160_p10, %p64_p3  ;;  %p1715_p13 = scmp.lt.s32.totalorder %s2055_s17, 2 }
  0x17   : > { %2837 = sst [smem:[#allocation17_spill]] %s2148_s26  ;;  %s2157_s28 = sand.u32 1, %s2043_s14  }
  0x18   : > { %s1685_s29 = smul.u32 24, %s2157_s28  ;;  %p2165_p0 = pnand %p1715_p13, %p2131_p4 }
  0x19   : > { %s2161_s30 = smul.u32 48, %s2051_s16  ;;  %s207_s5 = sand.u32 1, %s2055_s17  }
  0x1a   : > { %s1687_s6 = smul.u32 48, %s2157_s28  ;;  %s2840_s1 = sld [smem:[#allocation18_spill]] }
  0x1b   : > { %p1661_p1 = scmp.ge.s32.totalorder %s2055_s17, 1  ;;  %p256_p2 = scmp.lt.s32.totalorder %s2055_s17, 3 }
  0x1c   : > { %s211_s11 = scalar_lea.vmem [#allocation6], %s1687_s6  ;;  %s208_s21 = scalar_lea.sflag [#allocation7], %s207_s5 }
  0x1d   : > { %s221_s19 = sshll.u32 %s211_s11, 4  ;;  %s2057_s22 = smov 128   ;;  %s222_s19 = int_to_ptr.vmem [resolvable:$true] %s221_s19 }
  0x1e   : > { %s2058_s23 = smov 8   ;;  %p2179_p3 = pnand %p1661_p1, %p256_p2 }
  0x1f   : > { %s194_s6 = scalar_lea.hbm %s2818_s0, %s2161_s30  ;;  %s181_s5 = scalar_lea.sflag [#allocation4], %s2157_s28 }
  0x20   : > { %s218_s9 = scalar_lea.hbm %s2840_s1, %s2161_s30  ;;  %s195_s11 = sshll.u32 %s194_s6, 4  ;;  %s196_s11 = int_to_ptr.hbm [resolvable:$true] %s195_s11 }
  0x21   : > { %s219_s10 = sshll.u32 %s218_s9, 4  ;;  %s184_s1 = scalar_lea.vmem [#allocation3], %s1685_s29  ;;  %s220_s10 = int_to_ptr.hbm [resolvable:$true] %s219_s10 }
  0x22   : > { %1707 = dma.hbm_to_vmem [thread:$0]  (!%p2165_p0), %s220_s10, 768, %s222_s19, %s208_s21, %s2057_s22, %s2057_s22, %s2058_s23  }
  0x23   : > { %s197_s20 = sshll.u32 %s184_s1, 4  ;;  %s2059_s16 = smov 256   ;;  %s198_s20 = int_to_ptr.vmem [resolvable:$true] %s197_s20 }
  0x24   : > { %1704 = dma.hbm_to_vmem [thread:$0]  (!%p2165_p0), %s196_s11, 384, %s198_s20, %s181_s5, %s2059_s16, %s2057_s22, %s2058_s23  }
  0x25   : > { %s1683_s10 = sadd.s32 8, %s2161_s30  ;;  %s235_s19 = scalar_lea.vmem [#allocation8], %s1685_s29 }
  0x26   : > { %s248_s26 = sshll.u32 %s235_s19, 4  ;;  %s245_s8 = scalar_lea.hbm %s2820_s2, %s1683_s10  ;;  %s249_s26 = int_to_ptr.vmem [resolvable:$true] %s248_s26 }
  0x27   : > { %s246_s9 = sshll.u32 %s245_s8, 4  ;;  %260 = sbr.rel (%p2179_p3) target bundleno = 732 (0x2dc), region = 32  ;;  %s247_s9 = int_to_ptr.hbm [resolvable:$true] %s246_s9 }
  0x28   : > { %1710 = dma.hbm_to_vmem [thread:$0]  (!%p2165_p0), %s247_s9, 384, %s249_s26, %s208_s21, %s2059_s16, %s2057_s22, %s2058_s23  }
  0x29   : > { %s2203_s1 = sand.u32 (!%p2179_p3), 1, %s2039_s13  }
  0x2a   : > { %s263_s20 = scalar_lea.sflag (!%p2179_p3), [#allocation4], %s2203_s1 }
  0x2c   : > { %2022 = dma.done.wait (%p2139_p8), %s263_s20, 384  }
  0x2d   : > { %2024 = vsyncadd (%p2139_p8), %s263_s20, 4294966912  ;;  %s272_s14 = sand.u32 1, %s2119_s18   ;;  %s1692_s17 = smul.u32 48, %s2203_s1 }
  0x2e   : > { %s273_s16 = scalar_lea.sflag [#allocation7], %s272_s14 }
  0x2f   : > { %s2212_s26 = scalar_lea.vmem [#allocation6], %s1692_s17 }
  0x30   : > { %2026 = dma.done.wait (%p2139_p8), %s273_s16, 1152  }
  0x31   : > { %2028 = vsyncadd (%p2139_p8), %s273_s16, 4294966144  ;;  %v2060_v0 = vmov 0.0   ;;  %s2061_s28 = smov 127   ;;  %s2062_s29 = smov 1   ;;  %v331_v1 = vlaneseq  ;;  %vm2827_vm0 = vcmask 130048   ;;  %v365_v2 = vld [vmem:[%s2212_s26 + $0x8] sm:$0xff] }
  0x32   : > { %1783 = vrot.lane.b32.xlu1 %v2060_v0, %s2061_s28  ;;  %1778 = vrot.lane.b32.xlu0 %v2060_v0, %s2062_s29  ;;  %367 = vst.msk [vmem:[#allocation2 + $0x10] sm:$0xff] %vm2827_vm0, %v365_v2  ;;  %s2063_s18 = smov 2   ;;  %v364_v4 = vld [vmem:[%s2212_s26] sm:$0xff]  ;;  %v1665_v5 = vld [vmem:[%s2212_s26 + $0x18] sm:$0xff]  ;;  %s2064_s24 = smov 126  }
  0x33   : > { %v2225_v3 = vand.u32 127, %v331_v1  ;;  %366 = vst.msk [vmem:[#allocation2 + $0x8] sm:$0xff] %vm2827_vm0, %v364_v4  ;;  %v1664_v8 = vld [vmem:[%s2212_s26 + $0x10] sm:$0xff]  ;;  %v1669_v9 = vld [vmem:[%s2212_s26 + $0x28] sm:$0xff]  ;;  %v1668_v13 = vld [vmem:[%s2212_s26 + $0x20] sm:$0xff]  ;;  %v2346_v45 = vshrl.u32 %v331_v1, 7 }
  0x34   : > { %s1662_s30 = sshll.u32 %s2203_s1, 4  ;;  %s1684_s4 = sshll.u32 %s2047_s15, 4 }
  0x35   : > { %vm356_vm1 = vcmp.lt.s32.totalorder %v2225_v3, 16  ;;  %vm447_vm2 = vcmp.lt.s32.totalorder %v2346_v45, 7  ;;  %vm477_vm3 = vcmp.lt.s32.totalorder %v2346_v45, 6  ;;  %vm2828_vm4 = vcmp.lt.s32.totalorder %v2346_v45, 1  ;;  %s1516_s23 = scalar_lea.hbm %s2821_s3, %s1684_s4  ;;  %s319_s7 = scalar_lea.vmem [#allocation9], %s1662_s30 }
  0x36   : > { %vm468_vm5 = vcmp.lt.s32.totalorder %v2346_v45, 2  ;;  %s1517_s15 = sshll.u32 %s319_s7, 4  ;;  %s1519_s6 = sshll.u32 %s1516_s23, 4  ;;  %s1518_s15 = int_to_ptr.vmem [resolvable:$true] %s1517_s15  ;;  %s1520_s6 = int_to_ptr.hbm [resolvable:$true] %s1519_s6 }
  0x37   : > { %s1503_s11 = scalar_lea.sflag [#allocation5], %s2203_s1  ;;  %s1983_s5 = sshra.s32 %s1520_s6, 4  ;;  %s1984_s5 = int_to_ptr.hbm [resolvable:$true] %s1983_s5 }
  0x38   : > { %s1985_s10 = scalar_lea.hbm %s1984_s5, 16  ;;  %s1989_s9 = scalar_lea.hbm %s2821_s3, 32 }
  0x39   : > { %v372_v6 = vld [vmem:[#allocation2 + $0x10] sm:$0xff]  ;;  %p1986_p4 = scmp.ne.s32.totalorder %s1984_s5, %s1985_s10  ;;  %p1990_p7 = scmp.lt.s32.totalorder %s1984_s5, %s2821_s3 }
  0x3a   : > { %1788 = vrot.lane.b32.xlu0 %v2060_v0, %s2063_s18  ;;  %v2235_v7 = vsel %vm356_vm1, %v372_v6, 0.0  ;;  %669 = vst.msk [vmem:[#allocation2 + $0x10] sm:$0xff] %vm2827_vm0, %v1665_v5  ;;  %v371_v10 = vld [vmem:[#allocation2 + $0x8] sm:$0xff]  ;;  %p1991_p8 = scmp.lt.s32.totalorder %s1989_s9, %s1985_s10 }
  0x3b   : > { %382 = vrot.lane.b32.xlu1 %v2235_v7, %s2062_s29  ;;  %v2244_v11 = vsel %vm356_vm1, %v371_v10, 0.0  ;;  %668 = vst.msk [vmem:[#allocation2 + $0x8] sm:$0xff] %vm2827_vm0, %v1664_v8  ;;  %p1987_p5 = pnand %p1986_p4, %p2143_p9 }
  0x3c   : > { %388 = vrot.lane.b32.xlu2 %v2244_v11, %s2061_s28  ;;  %p1992_p10 = por %p1991_p8, %p1990_p7 }
  0x3d   : > { %p1988_p6 = pneg %p1987_p5 }
  0x3f   : > { %p1993_p13 = pnand %p1992_p10, %p1988_p6 }
  0x41   : > { %v675_v12 = vld [vmem:[#allocation2 + $0x10] sm:$0xff] }
  0x42   : > { %380 = vrot.lane.b32.xlu0 %v2244_v11, %s2062_s29  ;;  %968 = vst.msk [vmem:[#allocation2 + $0x10] sm:$0xff] %vm2827_vm0, %v1669_v9  ;;  %v674_v14 = vld [vmem:[#allocation2 + $0x8] sm:$0xff]  ;;  %v2274_v16 = vsel %vm356_vm1, %v675_v12, 0.0 }
  0x43   : > { %408 = vrot.lane.b32.xlu1 %v2244_v11, %s2063_s18  ;;  %967 = vst.msk [vmem:[#allocation2 + $0x8] sm:$0xff] %vm2827_vm0, %v1668_v13  ;;  %v2264_v15 = vsel %vm356_vm1, %v674_v14, 0.0 }
  0x44   : > { %390 = vrot.lane.b32.xlu2 %v2235_v7, %s2061_s28 }
  0x49   : > { %v974_v19 = vld [vmem:[#allocation2 + $0x10] sm:$0xff] }
  0x4a   : > { %1793 = vrot.lane.b32.xlu0 %v2060_v0, %s2064_s24  ;;  %v973_v17 = vld [vmem:[#allocation2 + $0x8] sm:$0xff]  ;;  %v2306_v20 = vsel %vm356_vm1, %v974_v19, 0.0 }
  0x4b   : > { %416 = vrot.lane.b32.xlu1 %v2244_v11, %s2064_s24  ;;  %v2296_v18 = vsel %vm356_vm1, %v973_v17, 0.0 }
  0x4c   : > { %410 = vrot.lane.b32.xlu2 %v2235_v7, %s2063_s18 }
  0x52   : > { %1798 = vrot.lane.b32.xlu0 %v2060_v0, %s2062_s29 }
  0x53   : > { %691 = vrot.lane.b32.xlu1 %v2264_v15, %s2061_s28 }
  0x54   : > { %418 = vrot.lane.b32.xlu2 %v2235_v7, %s2064_s24 }
  0x5a   : > { %685 = vrot.lane.b32.xlu0 %v2274_v16, %s2062_s29 }
  0x5b   : > { %1808 = vrot.lane.b32.xlu1 %v2060_v0, %s2061_s28 }
  0x5c   : > { %683 = vrot.lane.b32.xlu2 %v2264_v15, %s2062_s29 }
  0x62   : > { %1803 = vrot.lane.b32.xlu0 %v2060_v0, %s2062_s29 }
  0x63   : > { %713 = vrot.lane.b32.xlu1 %v2274_v16, %s2063_s18 }
  0x64   : > { %693 = vrot.lane.b32.xlu2 %v2274_v16, %s2061_s28 }
  0x6a   : > { %711 = vrot.lane.b32.xlu0 %v2264_v15, %s2063_s18 }
  0x6b   : > { %721 = vrot.lane.b32.xlu1 %v2274_v16, %s2064_s24 }
  0x6c   : > { %1813 = vrot.lane.b32.xlu2 %v2060_v0, %s2063_s18 }
  0x72   : > { %719 = vrot.lane.b32.xlu0 %v2264_v15, %s2064_s24 }
  0x73   : > { %990 = vrot.lane.b32.xlu1 %v2296_v18, %s2061_s28 }
  0x74   : > { %1818 = vrot.lane.b32.xlu2 %v2060_v0, %s2064_s24 }
  0x7a   : > { %984 = vrot.lane.b32.xlu0 %v2306_v20, %s2062_s29 }
  0x7b   : > { %1828 = vrot.lane.b32.xlu1 %v2060_v0, %s2061_s28 }
  0x7c   : > { %982 = vrot.lane.b32.xlu2 %v2296_v18, %s2062_s29 }
  0x82   : > { %1823 = vrot.lane.b32.xlu0 %v2060_v0, %s2062_s29 }
  0x83   : > { %1012 = vrot.lane.b32.xlu1 %v2306_v20, %s2063_s18 }
  0x84   : > { %992 = vrot.lane.b32.xlu2 %v2306_v20, %s2061_s28 }
  0x8a   : > { %1010 = vrot.lane.b32.xlu0 %v2296_v18, %s2063_s18 }
  0x8b   : > { %1020 = vrot.lane.b32.xlu1 %v2306_v20, %s2064_s24 }
  0x8c   : > { %1833 = vrot.lane.b32.xlu2 %v2060_v0, %s2063_s18 }
  0x92   : > { %1018 = vrot.lane.b32.xlu0 %v2296_v18, %s2064_s24 }
  0x94   : > { %1838 = vrot.lane.b32.xlu2 %v2060_v0, %s2064_s24 }
  0x96   : > { %v389_v21 = vpop.permute.xlu2 %388 }
  0x9a   : > { %1853 = vrot.lane.b32.xlu0 %v2060_v0, %s2061_s28 }
  0x9c   : > { %1843 = vrot.lane.b32.xlu2 %v2060_v0, %s2061_s28 }
  0x9e   : > { %v391_v23 = vpop.permute.xlu2 %390 }
  0xa2   : > { %1863 = vrot.lane.b32.xlu0 %v2060_v0, %s2061_s28 }
  0xa4   : > { %v1779_v22 = vpop.permute.xlu0 %1778  ;;  %v1784_v24 = vpop.permute.xlu1 %1783  ;;  %1848 = vrot.lane.b32.xlu2 %v2060_v0, %s2062_s29 }
  0xa5   : > { %v1786_v34 = vunpack.i.h.bf16 %v1784_v24  ;;  %v1785_v35 = vunpack.i.l.bf16 %v1784_v24  ;;  %v1781_v36 = vunpack.i.h.bf16 %v1779_v22  ;;  %v1780_v37 = vunpack.i.l.bf16 %v1779_v22 }
  0xa6   : > { %v411_v26 = vpop.permute.xlu2 %410 }
  0xa7   : > { %v397_v41 = vadd.f32 %v1786_v34, %v1781_v36  ;;  %v394_v42 = vadd.f32 %v1785_v35, %v1780_v37 }
  0xa9   : > { %v401_v56 = vmul.f32 0.60653067, %v397_v41  ;;  %v398_v57 = vmul.f32 0.60653067, %v394_v42 }
  0xac   : > { %v1789_v25 = vpop.permute.xlu0 %1788  ;;  %1858 = vrot.lane.b32.xlu2 %v2060_v0, %s2062_s29 }
  0xad   : > { %v383_v27 = vpop.permute.xlu1 %382  ;;  %v1791_v47 = vunpack.i.h.bf16 %v1789_v25  ;;  %v1790_v48 = vunpack.i.l.bf16 %v1789_v25 }
  0xae   : > { %v396_v28 = vadd.f32 %v391_v23, %v383_v27  ;;  %v419_v29 = vpop.permute.xlu2 %418 }
  0xaf   : > { %v424_v33 = vadd.f32 %v419_v29, %v411_v26 }
  0xb0   : > { %v400_v32 = vmul.f32 0.60653067, %v396_v28 }
  0xb1   : > { %v428_v40 = vmul.f32 0.13533528, %v424_v33 }
  0xb2   : > { %v404_v39 = vadd.f32 %v400_v32, %v2235_v7 }
  0xb4   : > { %v381_v30 = vpop.permute.xlu0 %380  ;;  %v432_v52 = vadd.f32 %v428_v40, %v404_v39 }
  0xb5   : > { %v409_v31 = vpop.permute.xlu1 %408  ;;  %v395_v38 = vadd.f32 %v389_v21, %v381_v30 }
  0xb6   : > { %v2343_v44 = vpop.permute.xlu2 %683  ;;  %v436_v62 = vrot.slane %v432_v52, 7  ;;  %v445_v1 = vrot.slane %v432_v52, 1  ;;  %v466_v2 = vrot.slane %v432_v52, 6  ;;  %v475_v6 = vrot.slane %v432_v52, 2 }
  0xb7   : > { %v399_v43 = vmul.f32 0.60653067, %v395_v38 }
  0xb9   : > { %v403_v58 = vadd.f32 %v399_v43, %v2244_v11 }
  0xbc   : > { %v1794_v46 = vpop.permute.xlu0 %1793 }
  0xbd   : > { %v1796_v49 = vunpack.i.h.bf16 %v1794_v46  ;;  %v1795_v50 = vunpack.i.l.bf16 %v1794_v46  ;;  %v417_v51 = vpop.permute.xlu1 %416 }
  0xbe   : > { %v423_v53 = vadd.f32 %v417_v51, %v409_v31  ;;  %v694_v10 = vpop.permute.xlu2 %693 }
  0xbf   : > { %v425_v54 = vadd.f32 %v1796_v49, %v1791_v47  ;;  %v422_v55 = vadd.f32 %v1795_v50, %v1790_v48  ;;  %v2376_v48 = vrot.slane %v2060_v0, 7 }
  0xc0   : > { %v427_v59 = vmul.f32 0.13533528, %v423_v53 }
  0xc1   : > { %v429_v60 = vmul.f32 0.13533528, %v425_v54  ;;  %v426_v61 = vmul.f32 0.13533528, %v422_v55 }
  0xc2   : > { %v431_v63 = vadd.f32 %v427_v59, %v403_v58 }
  0xc3   : > { %v433_v4 = vadd.f32 %v429_v60, %v401_v56  ;;  %v430_v5 = vadd.f32 %v426_v61, %v398_v57 }
  0xc4   : > { %v435_v7 = vrot.slane %v431_v63, 7  ;;  %v444_v8 = vrot.slane %v431_v63, 1  ;;  %v465_v9 = vrot.slane %v431_v63, 6  ;;  %v2353_v11 = vpop.permute.xlu0 %1798  ;;  %v474_v17 = vrot.slane %v431_v63, 2 }
  0xc5   : > { %v446_v12 = vrot.slane %v433_v4, 1  ;;  %v476_v13 = vrot.slane %v433_v4, 2  ;;  %v434_v14 = vrot.slane %v430_v5, 7  ;;  %v2355_v19 = vpop.permute.xlu1 %691  ;;  %v464_v21 = vrot.slane %v430_v5, 6 }
  0xc6   : > { %v440_v22 = vsel %vm2828_vm4, %v435_v7, %v436_v62  ;;  %v470_v24 = vsel %vm468_vm5, %v465_v9, %v466_v2  ;;  %v449_v29 = vsel %vm447_vm2, %v444_v8, %v445_v1  ;;  %v479_v32 = vsel %vm477_vm3, %v474_v17, %v475_v6  ;;  %v1814_v36 = vpop.permute.xlu2 %1813 }
  0xc7   : > { %v448_v23 = vsel %vm447_vm2, %v445_v1, %v446_v12  ;;  %v478_v25 = vsel %vm477_vm3, %v475_v6, %v476_v13  ;;  %v441_v26 = vsel %vm2828_vm4, %v434_v14, %v435_v7  ;;  %v471_v31 = vsel %vm468_vm5, %v464_v21, %v465_v9 }
  0xc8   : > { %v454_v27 = vadd.f32 %v448_v23, %v440_v22  ;;  %v484_v28 = vadd.f32 %v478_v25, %v470_v24  ;;  %v453_v30 = vadd.f32 %v449_v29, %v441_v26  ;;  %v483_v34 = vadd.f32 %v479_v32, %v471_v31 }
  0xc9   : > { %v1816_v1 = vunpack.i.h.bf16 %v1814_v36  ;;  %v2402_v7 = vrot.slane %v2060_v0, 1  ;;  %v1815_v13 = vunpack.i.l.bf16 %v1814_v36  ;;  %v1801_v25 = vunpack.i.h.bf16 %v2353_v11 }
  0xca   : > { %v458_v33 = vmul.f32 0.60653067, %v454_v27  ;;  %v457_v35 = vmul.f32 0.60653067, %v453_v30  ;;  %v488_v39 = vmul.f32 0.13533528, %v484_v28 }
  0xcb   : > { %v487_v42 = vmul.f32 0.13533528, %v483_v34 }
  0xcc   : > { %v686_v37 = vpop.permute.xlu0 %685  ;;  %v462_v38 = vadd.f32 %v458_v33, %v432_v52  ;;  %v461_v41 = vadd.f32 %v457_v35, %v431_v63 }
  0xcd   : > { %v1809_v40 = vpop.permute.xlu1 %1808  ;;  %v699_v6 = vadd.f32 %v694_v10, %v686_v37  ;;  %v698_v10 = vadd.f32 %v2355_v19, %v2343_v44 }
  0xce   : > { %v492_v43 = vadd.f32 %v488_v39, %v462_v38  ;;  %v491_v46 = vadd.f32 %v487_v42, %v461_v41  ;;  %v1819_v54 = vpop.permute.xlu2 %1818  ;;  %v1811_v2 = vunpack.i.h.bf16 %v1809_v40  ;;  %v1810_v14 = vunpack.i.l.bf16 %v1809_v40 }
  0xcf   : > { %v1821_v4 = vunpack.i.h.bf16 %v1819_v54  ;;  %v1820_v17 = vunpack.i.l.bf16 %v1819_v54  ;;  %v703_v26 = vmul.f32 0.60653067, %v699_v6  ;;  %v702_v34 = vmul.f32 0.60653067, %v698_v10 }
  0xd0   : > { %v496_v47 = vsel %vm356_vm1, %v492_v43, 0.0  ;;  %v495_v49 = vsel %vm356_vm1, %v491_v46, 0.0  ;;  %v697_v29 = vadd.f32 %v1810_v14, %v1801_v25 }
  0xd1   : > { %530 = vrot.lane.b32.xlu2 %v496_v47, %s2062_s29  ;;  %540 = vrot.lane.b32.xlu0 %v495_v49, %s2061_s28  ;;  %v499_v50 = vrot.slane %v495_v49, 7  ;;  %v2383_v51 = vmul.f32 2.0, %v495_v49  ;;  %v515_v52 = vrot.slane %v495_v49, 1  ;;  %v516_v53 = vrot.slane %v496_v47, 1 }
  0xd2   : > { %528 = vrot.lane.b32.xlu1 %v495_v49, %s2062_s29  ;;  %v500_v58 = vrot.slane %v496_v47, 7  ;;  %v2393_v62 = vmul.f32 2.0, %v496_v47  ;;  %v728_v22 = vadd.f32 %v1821_v4, %v1816_v1  ;;  %v725_v30 = vadd.f32 %v1820_v17, %v1815_v13 }
  0xd3   : > { %v504_v56 = vsel %vm2828_vm4, %v2376_v48, %v499_v50  ;;  %v519_v60 = vsel %vm447_vm2, %v515_v52, %v516_v53  ;;  %v518_v27 = vsel %vm447_vm2, %v516_v53, %v2402_v7  ;;  %v707_v35 = vadd.f32 %v703_v26, %v2274_v16 }
  0xd4   : > { %v2385_v55 = vpop.permute.xlu0 %1803  ;;  %v511_v59 = vadd.f32 %v2383_v51, %v504_v56  ;;  %v503_v63 = vsel %vm2828_vm4, %v499_v50, %v500_v58  ;;  %v732_v32 = vmul.f32 0.13533528, %v728_v22  ;;  %v701_v19 = vmul.f32 0.60653067, %v697_v29 }
  0xd5   : > { %v714_v57 = vpop.permute.xlu1 %713  ;;  %v1805_v5 = vunpack.i.l.bf16 %v2385_v55  ;;  %v512_v12 = vadd.f32 %v2393_v62, %v503_v63  ;;  %v729_v37 = vmul.f32 0.13533528, %v725_v30  ;;  %v706_v42 = vadd.f32 %v702_v34, %v2264_v15 }
  0xd6   : > { %v523_v61 = vadd.f32 %v519_v60, %v511_v59  ;;  %v2404_v8 = vpop.permute.xlu2 %982 }
  0xd7   : > { %v700_v23 = vadd.f32 %v1811_v2, %v1805_v5  ;;  %v524_v28 = vadd.f32 %v518_v27, %v512_v12  ;;  %v733_v46 = vadd.f32 %v729_v37, %v701_v19 }
  0xd9   : > { %560 = vrot.lane.b32.xlu2 %v523_v61, %s2061_s28  ;;  %552 = vrot.lane.b32.xlu0 %v523_v61, %s2062_s29  ;;  %v704_v33 = vmul.f32 0.60653067, %v700_v23  ;;  %v737_v61 = vrot.slane %v733_v46, 7  ;;  %v765_v4 = vrot.slane %v733_v46, 6 }
  0xda   : > { %542 = vrot.lane.b32.xlu1 %v496_v47, %s2061_s28 }
  0xdb   : > { %v736_v41 = vadd.f32 %v732_v32, %v704_v33 }
  0xdc   : > { %v712_v9 = vpop.permute.xlu0 %711 }
  0xdd   : > { %v722_v21 = vpop.permute.xlu1 %721  ;;  %v748_v50 = vrot.slane %v736_v41, 1 }
  0xde   : > { %v727_v24 = vadd.f32 %v722_v21, %v714_v57  ;;  %v993_v36 = vpop.permute.xlu2 %992  ;;  %v776_v57 = vrot.slane %v736_v41, 2 }
  0xe0   : > { %v731_v31 = vmul.f32 0.13533528, %v727_v24 }
  0xe1   : > { %562 = vrot.lane.b32.xlu0 %v524_v28, %s2061_s28 }
  0xe2   : > { %554 = vrot.lane.b32.xlu1 %v524_v28, %s2062_s29  ;;  %v735_v38 = vadd.f32 %v731_v31, %v707_v35  ;;  %v1806_v35 = vunpack.i.h.bf16 %v2385_v55 }
  0xe4   : > { %v720_v44 = vpop.permute.xlu0 %719  ;;  %v747_v47 = vrot.slane %v735_v38, 1  ;;  %v775_v52 = vrot.slane %v735_v38, 2  ;;  %v739_v16 = vrot.slane %v735_v38, 7  ;;  %v767_v58 = vrot.slane %v735_v38, 6 }
  0xe5   : > { %v726_v39 = vadd.f32 %v720_v44, %v712_v9  ;;  %v2416_v40 = vpop.permute.xlu1 %990 }
  0xe6   : > { %v1834_v59 = vpop.permute.xlu2 %1833  ;;  %v749_v2 = vsel %vm447_vm2, %v747_v47, %v748_v50  ;;  %v777_v9 = vsel %vm477_vm3, %v775_v52, %v776_v57  ;;  %v1800_v57 = vunpack.i.l.bf16 %v2353_v11 }
  0xe7   : > { %v730_v43 = vmul.f32 0.13533528, %v726_v39  ;;  %v1836_v44 = vunpack.i.h.bf16 %v1834_v59 }
  0xe9   : > { %v734_v49 = vadd.f32 %v730_v43, %v706_v42 }
  0xeb   : > { %v738_v53 = vrot.slane %v734_v49, 7  ;;  %v746_v54 = vrot.slane %v734_v49, 1  ;;  %v766_v56 = vrot.slane %v734_v49, 6  ;;  %v774_v63 = vrot.slane %v734_v49, 2 }
  0xec   : > { %v985_v60 = vpop.permute.xlu0 %984 }
  0xed   : > { %v1829_v1 = vpop.permute.xlu1 %1828  ;;  %v742_v15 = vsel %vm2828_vm4, %v738_v53, %v739_v16  ;;  %v770_v6 = vsel %vm468_vm5, %v766_v56, %v767_v58  ;;  %v743_v13 = vsel %vm2828_vm4, %v737_v61, %v738_v53  ;;  %v750_v14 = vsel %vm447_vm2, %v746_v54, %v747_v47 }
  0xee   : > { %v755_v5 = vadd.f32 %v749_v2, %v742_v15  ;;  %v783_v12 = vadd.f32 %v777_v9, %v770_v6  ;;  %v754_v21 = vadd.f32 %v750_v14, %v743_v13  ;;  %v771_v22 = vsel %vm468_vm5, %v765_v4, %v766_v56  ;;  %v1839_v27 = vpop.permute.xlu2 %1838 }
  0xef   : > { %v778_v23 = vsel %vm477_vm3, %v774_v63, %v775_v52  ;;  %v998_v39 = vadd.f32 %v993_v36, %v985_v60  ;;  %v1830_v41 = vunpack.i.l.bf16 %v1829_v1  ;;  %v1840_v42 = vunpack.i.l.bf16 %v1839_v27 }
  0xf0   : > { %v759_v17 = vmul.f32 0.60653067, %v755_v5  ;;  %v787_v25 = vmul.f32 0.13533528, %v783_v12  ;;  %v758_v10 = vmul.f32 0.60653067, %v754_v21  ;;  %v782_v26 = vadd.f32 %v778_v23, %v771_v22 }
  0xf1   : > { %v1841_v43 = vunpack.i.h.bf16 %v1839_v27  ;;  %v1831_v50 = vunpack.i.h.bf16 %v1829_v1  ;;  %v1002_v58 = vmul.f32 0.60653067, %v998_v39  ;;  %v997_v9 = vadd.f32 %v2416_v40, %v2404_v8 }
  0xf2   : > { %v763_v24 = vadd.f32 %v759_v17, %v735_v38  ;;  %v762_v30 = vadd.f32 %v758_v10, %v734_v49  ;;  %v786_v31 = vmul.f32 0.13533528, %v782_v26  ;;  %v1835_v38 = vunpack.i.l.bf16 %v1834_v59 }
  0xf3   : > { %v996_v59 = vadd.f32 %v1830_v41, %v1806_v35  ;;  %v1027_v63 = vadd.f32 %v1841_v43, %v1836_v44  ;;  %v1006_v23 = vadd.f32 %v1002_v58, %v2306_v20  ;;  %v1001_v10 = vmul.f32 0.60653067, %v997_v9 }
  0xf4   : > { %v2435_v28 = vpop.permute.xlu0 %1823  ;;  %v791_v29 = vadd.f32 %v787_v25, %v763_v24  ;;  %v790_v34 = vadd.f32 %v786_v31, %v762_v30  ;;  %v1024_v60 = vadd.f32 %v1840_v42, %v1835_v38 }
  0xf5   : > { %v1013_v32 = vpop.permute.xlu1 %1012  ;;  %v1825_v55 = vunpack.i.l.bf16 %v2435_v28  ;;  %v1000_v21 = vmul.f32 0.60653067, %v996_v59  ;;  %v1031_v24 = vmul.f32 0.13533528, %v1027_v63  ;;  %v1005_v30 = vadd.f32 %v1001_v10, %v2296_v18 }
  0xf6   : > { %v795_v33 = vsel %vm356_vm1, %v791_v29, 0.0  ;;  %v794_v19 = vsel %vm356_vm1, %v790_v34, 0.0  ;;  %v2450_v53 = vpop.permute.xlu2 %1843  ;;  %v1028_v22 = vmul.f32 0.13533528, %v1024_v60 }
  0xf7   : > { %841 = vrot.lane.b32.xlu2 %v795_v33, %s2061_s28  ;;  %829 = vrot.lane.b32.xlu1 %v795_v33, %s2062_s29  ;;  %v799_v37 = vrot.slane %v795_v33, 7  ;;  %v798_v46 = vrot.slane %v794_v19, 7  ;;  %v2445_v47 = vmul.f32 2.0, %v795_v33  ;;  %v2447_v49 = vmul.f32 2.0, %v794_v19 }
  0xf8   : > { %827 = vrot.lane.b32.xlu0 %v794_v19, %s2062_s29  ;;  %v815_v52 = vrot.slane %v795_v33, 1  ;;  %v814_v16 = vrot.slane %v794_v19, 1  ;;  %v1845_v1 = vunpack.i.l.bf16 %v2450_v53  ;;  %v999_v4 = vadd.f32 %v1831_v50, %v1825_v55 }
  0xf9   : > { %v802_v36 = vsel %vm2828_vm4, %v798_v46, %v799_v37  ;;  %v803_v56 = vsel %vm2828_vm4, %v2376_v48, %v798_v46  ;;  %v1032_v29 = vadd.f32 %v1028_v22, %v1000_v21 }
  0xfa   : > { %v811_v15 = vadd.f32 %v2445_v47, %v802_v36  ;;  %v810_v2 = vadd.f32 %v2447_v49, %v803_v56  ;;  %v817_v5 = vsel %vm447_vm2, %v815_v52, %v2402_v7  ;;  %v818_v6 = vsel %vm447_vm2, %v814_v16, %v815_v52 }
  0xfb   : > { %v2469_v12 = vadd.f32 %v1845_v1, %v1800_v57  ;;  %v1003_v25 = vmul.f32 0.60653067, %v999_v4  ;;  %v1036_v34 = vrot.slane %v1032_v29, 7  ;;  %v1064_v43 = vrot.slane %v1032_v29, 6 }
  0xfc   : > { %v1011_v54 = vpop.permute.xlu0 %1010  ;;  %v823_v13 = vadd.f32 %v817_v5, %v811_v15  ;;  %v822_v14 = vadd.f32 %v818_v6, %v810_v2 }
  0xfd   : > { %v1021_v61 = vpop.permute.xlu1 %1020  ;;  %v1035_v40 = vadd.f32 %v1031_v24, %v1003_v25 }
  0xfe   : > { %v1026_v11 = vadd.f32 %v1021_v61, %v1013_v32 }
  0xff   : > { %839 = vrot.lane.b32.xlu1 %v794_v19, %s2061_s28  ;;  %853 = vrot.lane.b32.xlu2 %v823_v13, %s2062_s29  ;;  %v1047_v44 = vrot.slane %v1035_v40, 1  ;;  %v1075_v19 = vrot.slane %v1035_v40, 2 }
 0x100   : > { %v1030_v17 = vmul.f32 0.13533528, %v1026_v11  ;;  %859 = vrot.lane.b32.xlu0 %v822_v14, %s2061_s28 }
 0x102   : > { %v1034_v27 = vadd.f32 %v1030_v17, %v1006_v23 }
 0x104   : > { %v1019_v26 = vpop.permute.xlu0 %1018  ;;  %v1046_v32 = vrot.slane %v1034_v27, 1  ;;  %v1074_v33 = vrot.slane %v1034_v27, 2  ;;  %v1038_v20 = vrot.slane %v1034_v27, 7  ;;  %v1066_v37 = vrot.slane %v1034_v27, 6 }
 0x105   : > { %v1025_v8 = vadd.f32 %v1019_v26, %v1011_v54 }
 0x106   : > { %v1048_v46 = vsel %vm447_vm2, %v1046_v32, %v1047_v44  ;;  %v1076_v18 = vsel %vm477_vm3, %v1074_v33, %v1075_v19 }
 0x107   : > { %851 = vrot.lane.b32.xlu1 %v822_v14, %s2062_s29  ;;  %v1029_v31 = vmul.f32 0.13533528, %v1025_v8 }
 0x109   : > { %v1033_v35 = vadd.f32 %v1029_v31, %v1005_v30  ;;  %v1849_v30 = vpop.permute.xlu2 %1848 }
 0x10b   : > { %v1037_v38 = vrot.slane %v1033_v35, 7  ;;  %v1045_v39 = vrot.slane %v1033_v35, 1  ;;  %v1065_v41 = vrot.slane %v1033_v35, 6  ;;  %v1073_v42 = vrot.slane %v1033_v35, 2 }
 0x10c   : > { %v1854_v40 = vpop.permute.xlu0 %1853 }
 0x10d   : > { %v1041_v50 = vsel %vm2828_vm4, %v1037_v38, %v1038_v20  ;;  %v1069_v55 = vsel %vm468_vm5, %v1065_v41, %v1066_v37  ;;  %v1042_v52 = vsel %vm2828_vm4, %v1036_v34, %v1037_v38  ;;  %v1049_v16 = vsel %vm447_vm2, %v1045_v39, %v1046_v32 }
 0x10e   : > { %v1054_v54 = vadd.f32 %v1048_v46, %v1041_v50  ;;  %v1082_v36 = vadd.f32 %v1076_v18, %v1069_v55  ;;  %v1053_v56 = vadd.f32 %v1049_v16, %v1042_v52  ;;  %v1070_v57 = vsel %vm468_vm5, %v1064_v43, %v1065_v41 }
 0x10f   : > { %861 = vrot.lane.b32.xlu1 %v823_v13, %s2061_s28  ;;  %v1077_v58 = vsel %vm477_vm3, %v1073_v42, %v1074_v33  ;;  %v1846_v39 = vunpack.i.h.bf16 %v2450_v53  ;;  %v1826_v46 = vunpack.i.h.bf16 %v2435_v28  ;;  %v1851_v18 = vunpack.i.h.bf16 %v1849_v30 }
 0x110   : > { %v1058_v59 = vmul.f32 0.60653067, %v1054_v54  ;;  %v1057_v60 = vmul.f32 0.60653067, %v1053_v56  ;;  %v1081_v61 = vadd.f32 %v1077_v58, %v1070_v57  ;;  %v1086_v1 = vmul.f32 0.13533528, %v1082_v36 }
 0x111   : > { %v2523_v33 = vpop.permute.xlu2 %1858  ;;  %v1850_v55 = vunpack.i.l.bf16 %v1849_v30  ;;  %v1856_v52 = vunpack.i.h.bf16 %v1854_v40  ;;  %v1855_v16 = vunpack.i.l.bf16 %v1854_v40  ;;  %v549_v56 = vadd.f32 %v1846_v39, %v1826_v46 }
 0x112   : > { %v1062_v63 = vadd.f32 %v1058_v59, %v1034_v27  ;;  %v1061_v15 = vadd.f32 %v1057_v60, %v1033_v35  ;;  %v1085_v2 = vmul.f32 0.13533528, %v1081_v61 }
 0x113   : > { %v848_v53 = vadd.f32 %v1856_v52, %v1851_v18  ;;  %v845_v60 = vadd.f32 %v1855_v16, %v1850_v55 }
 0x114   : > { %v1090_v4 = vadd.f32 %v1086_v1, %v1062_v63  ;;  %v1089_v5 = vadd.f32 %v1085_v2, %v1061_v15  ;;  %v2521_v31 = vpop.permute.xlu0 %1863  ;;  %v581_v63 = vrot.slane %v549_v56, 1 }
 0x116   : > { %v1094_v6 = vsel %vm356_vm1, %v1090_v4, 0.0  ;;  %v1093_v11 = vsel %vm356_vm1, %v1089_v5, 0.0  ;;  %v880_v5 = vrot.slane %v848_v53, 1 }
 0x117   : > { %1140 = vrot.lane.b32.xlu2 %v1094_v6, %s2061_s28  ;;  %1126 = vrot.lane.b32.xlu0 %v1093_v11, %s2062_s29  ;;  %v1097_v9 = vrot.slane %v1093_v11, 7  ;;  %v2499_v13 = vmul.f32 2.0, %v1093_v11  ;;  %v1113_v14 = vrot.slane %v1093_v11, 1  ;;  %v1114_v17 = vrot.slane %v1094_v6, 1 }
 0x118   : > { %1128 = vrot.lane.b32.xlu1 %v1094_v6, %s2062_s29  ;;  %v1098_v21 = vrot.slane %v1094_v6, 7  ;;  %v2502_v22 = vmul.f32 2.0, %v1094_v6  ;;  %v869_v6 = vrot.slane %v845_v60, 7 }
 0x119   : > { %v1102_v23 = vsel %vm2828_vm4, %v2376_v48, %v1097_v9  ;;  %v1117_v10 = vsel %vm447_vm2, %v1113_v14, %v1114_v17  ;;  %v1116_v29 = vsel %vm447_vm2, %v1114_v17, %v2402_v7 }
 0x11a   : > { %v1109_v24 = vadd.f32 %v2499_v13, %v1102_v23  ;;  %v1101_v25 = vsel %vm2828_vm4, %v1097_v9, %v1098_v21 }
 0x11b   : > { %v1110_v26 = vadd.f32 %v2502_v22, %v1101_v25 }
 0x11c   : > { %v1121_v27 = vadd.f32 %v1117_v10, %v1109_v24 }
 0x11d   : > { %v1122_v8 = vadd.f32 %v1116_v29, %v1110_v26 }
 0x11f   : > { %1150 = vrot.lane.b32.xlu2 %v1121_v27, %s2062_s29  ;;  %1152 = vrot.lane.b32.xlu0 %v1122_v8, %s2062_s29 }
 0x120   : > { %1138 = vrot.lane.b32.xlu1 %v1093_v11, %s2061_s28 }
 0x127   : > { %1160 = vrot.lane.b32.xlu2 %v1122_v8, %s2061_s28 }
 0x128   : > { %1158 = vrot.lane.b32.xlu1 %v1121_v27, %s2061_s28 }
 0x12b   : > { %v531_v44 = vpop.permute.xlu2 %530 }
 0x12c   : > { %v536_v41 = vadd.f32 %v531_v44, %v2393_v62 }
 0x133   : > { %v561_v37 = vpop.permute.xlu2 %560 }
 0x143   : > { %v541_v34 = vpop.permute.xlu0 %540 }
 0x144   : > { %v529_v32 = vpop.permute.xlu1 %528 }
 0x145   : > { %v535_v42 = vadd.f32 %v529_v32, %v2383_v51 }
 0x147   : > { %v547_v57 = vadd.f32 %v541_v34, %v535_v42 }
 0x149   : > { %v571_v28 = vrot.slane %v547_v57, 7  ;;  %v579_v15 = vrot.slane %v547_v57, 1 }
 0x14b   : > { %v553_v19 = vpop.permute.xlu0 %552 }
 0x14c   : > { %v543_v35 = vpop.permute.xlu1 %542  ;;  %v567_v44 = vsub.f32 %v553_v19, %v561_v37 }
 0x14d   : > { %v548_v54 = vadd.f32 %v543_v35, %v536_v41 }
 0x14e   : > { %v591_v55 = vmul.f32 %v567_v44, %v567_v44 }
 0x14f   : > { %v572_v62 = vrot.slane %v548_v54, 7  ;;  %v580_v61 = vrot.slane %v548_v54, 1 }
 0x151   : > { %v842_v36 = vpop.permute.xlu2 %841  ;;  %v575_v11 = vsel %vm2828_vm4, %v571_v28, %v572_v62  ;;  %v582_v9 = vsel %vm447_vm2, %v580_v61, %v581_v63  ;;  %v583_v14 = vsel %vm447_vm2, %v579_v15, %v580_v61  ;;  %v1860_v63 = vunpack.i.l.bf16 %v2523_v33 }
 0x152   : > { %v588_v29 = vsub.f32 %v575_v11, %v582_v9 }
 0x153   : > { %v563_v38 = vpop.permute.xlu0 %562 }
 0x154   : > { %v555_v20 = vpop.permute.xlu1 %554 }
 0x155   : > { %v568_v39 = vsub.f32 %v555_v20, %v563_v38 }
 0x159   : > { %v854_v23 = vpop.permute.xlu2 %853 }
 0x169   : > { %v830_v43 = vpop.permute.xlu1 %829 }
 0x16a   : > { %v835_v50 = vadd.f32 %v830_v43, %v2445_v47  ;;  %v828_v58 = vpop.permute.xlu0 %827  ;;  %v570_v47 = vrot.slane %v2469_v12, 7  ;;  %v592_v43 = vmul.f32 %v568_v39, %v568_v39 }
 0x16b   : > { %v834_v51 = vadd.f32 %v828_v58, %v2447_v49 }
 0x16c   : > { %v847_v59 = vadd.f32 %v842_v36, %v835_v50  ;;  %v576_v12 = vsel %vm2828_vm4, %v570_v47, %v571_v28  ;;  %v596_v50 = vmul.f32 %v588_v29, %v588_v29  ;;  %v1866_v28 = vunpack.i.h.bf16 %v2521_v31 }
 0x16d   : > { %v587_v27 = vsub.f32 %v576_v12, %v583_v14 }
 0x16e   : > { %v879_v2 = vrot.slane %v847_v59, 1  ;;  %v871_v49 = vrot.slane %v847_v59, 7  ;;  %v2554_v16 = vadd.f32 %v596_v50, %v592_v43 }
 0x16f   : > { %v595_v18 = vmul.f32 %v587_v27, %v587_v27 }
 0x170   : > { %v881_v24 = vsel %vm447_vm2, %v879_v2, %v880_v5  ;;  %1867 = vrsqrt.f32 %v2554_v16  ;;  %vm633_vm0 = vcmp.eq.f32.partialorder %v2554_v16, inf }
 0x171   : > { %v840_v1 = vpop.permute.xlu1 %839  ;;  %v1141_v46 = vpop.permute.xlu2 %1140  ;;  %v2556_v56 = vadd.f32 %v595_v18, %v591_v55 }
 0x172   : > { %v846_v4 = vadd.f32 %v840_v1, %v834_v51  ;;  %v860_v30 = vpop.permute.xlu0 %859  ;;  %v1861_v51 = vunpack.i.h.bf16 %v2523_v33  ;;  %v1865_v1 = vunpack.i.l.bf16 %v2521_v31 }
 0x173   : > { %1869 = vrsqrt.f32 %v2556_v56 }
 0x174   : > { %v870_v17 = vrot.slane %v846_v4, 7  ;;  %v878_v21 = vrot.slane %v846_v4, 1 }
 0x176   : > { %v874_v25 = vsel %vm2828_vm4, %v870_v17, %v871_v49  ;;  %v875_v10 = vsel %vm2828_vm4, %v869_v6, %v870_v17  ;;  %v882_v26 = vsel %vm447_vm2, %v878_v21, %v879_v2  ;;  %v2566_v62 = vpop.eup %1867  ;;  %v1147_v6 = vadd.f32 %v1866_v28, %v1861_v51 }
 0x177   : > { %v886_v8 = vsub.f32 %v875_v10, %v882_v26  ;;  %v887_v40 = vsub.f32 %v874_v25, %v881_v24  ;;  %v627_v2 = vmul.f32 %v2566_v62, %v2554_v16 }
 0x178   : > { %v1179_v25 = vrot.slane %v1147_v6, 1 }
 0x179   : > { %v2548_v32 = vadd.f32 %v886_v8, %v587_v27  ;;  %v2550_v34 = vadd.f32 %v887_v40, %v588_v29  ;;  %v852_v35 = vpop.permute.xlu1 %851  ;;  %v894_v57 = vmul.f32 %v886_v8, %v886_v8  ;;  %v895_v58 = vmul.f32 %v887_v40, %v887_v40  ;;  %v1151_v38 = vpop.permute.xlu2 %1150 }
 0x17a   : > { %v866_v41 = vsub.f32 %v852_v35, %v860_v30  ;;  %v2573_v47 = vpop.eup %1869  ;;  %v628_v31 = vmul.f32 %v2566_v62, %v627_v2 }
 0x17b   : > { %v615_v21 = vmul.f32 %v2573_v47, %v2556_v56 }
 0x17c   : > { %v2552_v42 = vadd.f32 %v866_v41, %v567_v44  ;;  %v890_v54 = vmul.f32 %v866_v41, %v866_v41  ;;  %v629_v40 = vmul.f32 0.5, %v628_v31 }
 0x17d   : > { %v616_v30 = vmul.f32 %v2573_v47, %v615_v21 }
 0x17e   : > { %v2559_v20 = vadd.f32 %v894_v57, %v890_v54 }
 0x181   : > { %v862_v52 = vpop.permute.xlu1 %861  ;;  %v1161_v11 = vpop.permute.xlu2 %1160 }
 0x182   : > { %v867_v36 = vsub.f32 %v854_v23, %v862_v52 }
 0x184   : > { %v891_v59 = vmul.f32 %v867_v36, %v867_v36  ;;  %v955_v19 = vadd.f32 %v867_v36, %v568_v39 }
 0x186   : > { %v2561_v37 = vadd.f32 %v895_v58, %v891_v59  ;;  %v630_v59 = vsub.f32 1.5, %v629_v40 }
 0x188   : > { %1871 = vrsqrt.f32 %v2561_v37 }
 0x189   : > { %1873 = vrsqrt.f32 %v2559_v20  ;;  %v1127_v53 = vpop.permute.xlu0 %1126 }
 0x18a   : > { %v1129_v60 = vpop.permute.xlu1 %1128  ;;  %v1133_v9 = vadd.f32 %v1127_v53, %v2499_v13 }
 0x18b   : > { %v1134_v61 = vadd.f32 %v1129_v60, %v2502_v22  ;;  %v1144_v22 = vadd.f32 %v1865_v1, %v1860_v63 }
 0x18d   : > { %v1146_v5 = vadd.f32 %v1141_v46, %v1134_v61  ;;  %v1168_v10 = vrot.slane %v1144_v22, 7 }
 0x18e   : > { %v2575_v15 = vpop.eup %1871 }
 0x18f   : > { %v2579_v4 = vpop.eup %1873  ;;  %v926_v33 = vmul.f32 %v2575_v15, %v2561_v37  ;;  %v1178_v23 = vrot.slane %v1146_v5, 1  ;;  %v1170_v29 = vrot.slane %v1146_v5, 7 }
 0x190   : > { %v914_v12 = vmul.f32 %v2579_v4, %v2559_v20 }
 0x191   : > { %v1153_v14 = vpop.permute.xlu0 %1152  ;;  %v927_v27 = vmul.f32 %v2575_v15, %v926_v33  ;;  %v1180_v44 = vsel %vm447_vm2, %v1178_v23, %v1179_v25  ;;  %v631_v25 = vmul.f32 %v2566_v62, %v630_v59 }
 0x192   : > { %v1166_v49 = vsub.f32 %v1153_v14, %v1161_v11  ;;  %v1139_v17 = vpop.permute.xlu1 %1138  ;;  %v915_v35 = vmul.f32 %v2579_v4, %v914_v12 }
 0x193   : > { %v1145_v24 = vadd.f32 %v1139_v17, %v1133_v9  ;;  %v928_v50 = vmul.f32 0.5, %v927_v27 }
 0x194   : > { %v1254_v26 = vadd.f32 %v1166_v49, %v955_v19  ;;  %v1190_v55 = vmul.f32 %v1166_v49, %v1166_v49  ;;  %v617_v19 = vmul.f32 0.5, %v616_v30  ;;  %v916_v53 = vmul.f32 0.5, %v915_v35 }
 0x195   : > { %v1169_v13 = vrot.slane %v1145_v24, 7  ;;  %v1177_v8 = vrot.slane %v1145_v24, 1 }
 0x196   : > { %v1346_v60 = vand.u32 2147483647, %v1254_v26  ;;  %vm1382_vm6 = vcmp.ge.f32.partialorder %v1254_v26, 0.0  ;;  %vm1370_vm5 = vcmp.eq.f32.partialorder %v1254_v26, 0.0  ;;  %v917_v14 = vsub.f32 1.5, %v916_v53 }
 0x197   : > { %v1173_v39 = vsel %vm2828_vm4, %v1169_v13, %v1170_v29  ;;  %v1174_v41 = vsel %vm2828_vm4, %v1168_v10, %v1169_v13  ;;  %v1181_v43 = vsel %vm447_vm2, %v1177_v8, %v1178_v23  ;;  %v618_v21 = vsub.f32 1.5, %v617_v19 }
 0x198   : > { %v1185_v46 = vsub.f32 %v1174_v41, %v1181_v43  ;;  %v1186_v18 = vsub.f32 %v1173_v39, %v1180_v44  ;;  %v1354_v6 = vmul.f32 0.41421357, %v1346_v60  ;;  %v918_v26 = vmul.f32 %v2579_v4, %v917_v14 }
 0x199   : > { %v619_v13 = vmul.f32 %v2573_v47, %v618_v21  ;;  %v632_v8 = vmul.f32 %v631_v25, %v2554_v16  ;;  %v935_v43 = vand.u32 2147483648, %v2561_v37  ;;  %vm635_vm4 = vcmp.eq.f32.partialorder %v2554_v16, 0.0 }
 0x19a   : > { %v1194_v52 = vmul.f32 %v1186_v18, %v1186_v18  ;;  %v1257_v54 = vadd.f32 %v1185_v46, %v2548_v32  ;;  %v1258_v36 = vadd.f32 %v1186_v18, %v2550_v34  ;;  %v1159_v57 = vpop.permute.xlu1 %1158  ;;  %v1193_v63 = vmul.f32 %v1185_v46, %v1185_v46 }
 0x19b   : > { %v1165_v58 = vsub.f32 %v1151_v38, %v1159_v57  ;;  %v929_v34 = vsub.f32 1.5, %v928_v50  ;;  %v919_v35 = vmul.f32 %v918_v26, %v2559_v20  ;;  %v620_v41 = vmul.f32 %v619_v13, %v2556_v56 }
 0x19c   : > { %v2602_v61 = vadd.f32 %v1194_v52, %v1190_v55  ;;  %v1349_v51 = vand.u32 2147483647, %v1257_v54  ;;  %vm1386_vm7 = vcmp.ge.f32.partialorder %v1258_v36, 0.0  ;;  %vm1373_vm8 = vcmp.eq.f32.partialorder %v1257_v54, 0.0 }
 0x19d   : > { %v1189_v28 = vmul.f32 %v1165_v58, %v1165_v58  ;;  %v1253_v1 = vadd.f32 %v1165_v58, %v2552_v42  ;;  %vm2606_vm9 = vmxor %vm1382_vm6, %vm1386_vm7  ;;  %vm1385_vm12 = vcmp.ge.f32.partialorder %v1257_v54, 0.0  ;;  %v1350_v42 = vand.u32 2147483647, %v1258_v36 }
 0x19e   : > { %1875 = vrsqrt.f32 %v2602_v61  ;;  %v1361_v32 = vmul.f32 0.41421357, %v1349_v51  ;;  %vm1374_vm14 = vcmp.eq.f32.partialorder %v1258_v36, 0.0  ;;  %v930_v17 = vmul.f32 %v2575_v15, %v929_v34 }
 0x19f   : > { %v2610_v2 = vadd.f32 %v1193_v63, %v1189_v28  ;;  %v1345_v5 = vand.u32 2147483647, %v1253_v1  ;;  %vm1369_vm10 = vcmp.eq.f32.partialorder %v1253_v1, 0.0  ;;  %vm1381_vm11 = vcmp.ge.f32.partialorder %v1253_v1, 0.0 }
 0x1a0   : > { %vm2612_vm13 = vmand %vm1369_vm10, %vm1373_vm8  ;;  %vm2625_vm6 = vcmp.lt.f32.partialorder %v1350_v42, %v1354_v6  ;;  %v1362_v49 = vmul.f32 0.41421357, %v1350_v42  ;;  %v931_v62 = vmul.f32 %v930_v17, %v2561_v37  ;;  %v634_v47 = vsel %vm633_vm0, %v2554_v16, %v632_v8 }
 0x1a1   : > { %1877 = vrsqrt.f32 %v2610_v2  ;;  %v1353_v11 = vmul.f32 0.41421357, %v1345_v5  ;;  %vm2617_vm15 = vcmp.lt.f32.partialorder %v1345_v5, %v1361_v32  ;;  %vm2621_vm3 = vmxor %vm1381_vm11, %vm1385_vm12  ;;  %v624_v46 = vand.u32 2147483648, %v2556_v56 }
 0x1a2   : > { %vm2634_vm8 = vmand %vm1370_vm5, %vm1374_vm14  ;;  %vm2643_vm11 = vcmp.lt.f32.partialorder %v1346_v60, %v1362_v49  ;;  %vm932_vm14 = vcmp.eq.f32.partialorder %v2561_v37, inf  ;;  %vm621_vm5 = vcmp.eq.f32.partialorder %v2556_v56, inf  ;;  %v636_v50 = vand.u32 2147483648, %v2554_v16 }
 0x1a3   : > { %vm2630_vm7 = vcmp.lt.f32.partialorder %v1349_v51, %v1353_v11  ;;  %v933_v4 = vsel %vm932_vm14, %v2561_v37, %v931_v62  ;;  %vm934_vm12 = vcmp.eq.f32.partialorder %v2561_v37, 0.0  ;;  %vm920_vm10 = vcmp.eq.f32.partialorder %v2559_v20, inf }
 0x1a4   : > { %v1876_v24 = vpop.eup %1875  ;;  %v936_v52 = vsel %vm934_vm12, %v935_v43, %v933_v4  ;;  %v921_v54 = vsel %vm920_vm10, %v2559_v20, %v919_v35  ;;  %v637_v57 = vsel %vm635_vm4, %v636_v50, %v634_v47  ;;  %v622_v59 = vsel %vm621_vm5, %v2556_v56, %v620_v41 }
 0x1a5   : > { %v1225_v15 = vmul.f32 %v1876_v24, %v2602_v61  ;;  %v923_v19 = vand.u32 2147483648, %v2559_v20  ;;  %vm1231_vm0 = vcmp.eq.f32.partialorder %v2602_v61, inf  ;;  %v1234_v37 = vand.u32 2147483648, %v2602_v61 }
 0x1a6   : > { %vm922_vm14 = vcmp.eq.f32.partialorder %v2559_v20, 0.0  ;;  %v951_v53 = vadd.f32 %v936_v52, %v637_v57  ;;  %vm1233_vm4 = vcmp.eq.f32.partialorder %v2602_v61, 0.0  ;;  %vm623_vm10 = vcmp.eq.f32.partialorder %v2556_v56, 0.0 }
 0x1a7   : > { %v1878_v27 = vpop.eup %1877  ;;  %v1226_v29 = vmul.f32 %v1876_v24, %v1225_v15  ;;  %v924_v51 = vsel %vm922_vm14, %v923_v19, %v921_v54  ;;  %v625_v32 = vsel %vm623_vm10, %v624_v46, %v622_v59  ;;  %vm1219_vm12 = vcmp.eq.f32.partialorder %v2610_v2, inf }
 0x1a8   : > { %v1213_v40 = vmul.f32 %v1878_v27, %v2610_v2  ;;  %v1222_v34 = vand.u32 2147483648, %v2610_v2  ;;  %v950_v5 = vadd.f32 %v924_v51, %v625_v32  ;;  %vm1221_vm5 = vcmp.eq.f32.partialorder %v2610_v2, 0.0 }
 0x1a9   : > { %v1227_v30 = vmul.f32 0.5, %v1226_v29 }
 0x1aa   : > { %v1214_v44 = vmul.f32 %v1878_v27, %v1213_v40 }
 0x1ab   : > { %v1228_v39 = vsub.f32 1.5, %v1227_v30 }
 0x1ac   : > { %v1215_v18 = vmul.f32 0.5, %v1214_v44 }
 0x1ad   : > { %v1229_v55 = vmul.f32 %v1876_v24, %v1228_v39 }
 0x1ae   : > { %v1216_v36 = vsub.f32 1.5, %v1215_v18 }
 0x1af   : > { %v1230_v58 = vmul.f32 %v1229_v55, %v2602_v61 }
 0x1b0   : > { %v1217_v16 = vmul.f32 %v1878_v27, %v1216_v36 }
 0x1b1   : > { %v1232_v60 = vsel %vm1231_vm0, %v2602_v61, %v1230_v58  ;;  %vm2858_vm0 = vcmp.lt.s32.totalorder %v2346_v45, 1 }
 0x1b2   : > { %v1235_v63 = vsel %vm1233_vm4, %v1234_v37, %v1232_v60  ;;  %v1218_v28 = vmul.f32 %v1217_v16, %v2610_v2  ;;  %vm2859_vm14 = vmmov %vm2858_vm0 }
 0x1b3   : > { %v1250_v1 = vadd.f32 %v1235_v63, %v951_v53 }
 0x1b4   : > { %v1220_v20 = vsel %vm1219_vm12, %v2610_v2, %v1218_v28 }
 0x1b5   : > { %v1262_v61 = vsel %vm356_vm1, %v1250_v1, 0.0  ;;  %v1223_v6 = vsel %vm1221_vm5, %v1222_v34, %v1220_v20 }
 0x1b6   : > { %v1286_v42 = vrot.slane %v1262_v61, 1  ;;  %v1249_v11 = vadd.f32 %v1223_v6, %v950_v5  ;;  %v1294_v2 = vrot.slane %v1262_v61, 7 }
 0x1b8   : > { %v1288_v56 = vsel %vm447_vm2, %v1286_v42, %v2402_v7  ;;  %v1261_v14 = vsel %vm356_vm1, %v1249_v11, 0.0  ;;  %vm2065_vm1 = vmmov 1  }
 0x1b9   : > { %1308 = vrot.lane.b32.xlu1 %v1288_v56, %s2061_s28  ;;  %1266 = vrot.lane.b32.xlu2 %v1261_v14, %s2061_s28  ;;  %v1285_v49 = vrot.slane %v1261_v14, 1  ;;  %v1293_v17 = vrot.slane %v1261_v14, 7  ;;  %vm1394_vm4 = vmxor %vm2606_vm9, %vm2065_vm1 }
 0x1ba   : > { %vm1393_vm10 = vmxor %vm2621_vm3, %vm2065_vm1 }
 0x1bb   : > { %v1289_v21 = vsel %vm447_vm2, %v1285_v49, %v1286_v42  ;;  %v1298_v24 = vsel %vm2858_vm0, %v2376_v48, %v1293_v17  ;;  %v1297_v25 = vsel %vm2859_vm14, %v1293_v17, %v1294_v2  ;;  %vm2860_vm9 = vmor %vm2630_vm7, %vm2612_vm13  ;;  %v333_v42 = vadd.s32 8, %v2346_v45 }
 0x1bc   : > { %1306 = vrot.lane.b32.xlu0 %v1289_v21, %s2061_s28  ;;  %v1301_v15 = vmax.f32 %v1289_v21, %v1298_v24  ;;  %v1302_v26 = vmax.f32 %v1288_v56, %v1297_v25  ;;  %vm2861_vm3 = vmor %vm2625_vm6, %vm2634_vm8  ;;  %vm2864_vm8 = vcmp.lt.s32.totalorder %v2346_v45, 1 }
 0x1bd   : > { %v341_v11 = vadd.s32 4294967288, %v333_v42 }
 0x1c1   : > { %1314 = vrot.lane.b32.xlu2 %v1298_v24, %s2062_s29  ;;  %1326 = vrot.lane.b32.xlu1 %v1289_v21, %s2062_s29 }
 0x1c4   : > { %1316 = vrot.lane.b32.xlu0 %v1297_v25, %s2062_s29 }
 0x1c9   : > { %1328 = vrot.lane.b32.xlu2 %v1288_v56, %s2062_s29  ;;  %1336 = vrot.lane.b32.xlu1 %v1297_v25, %s2061_s28  ;;  %v334_v56 = vadd.s32 16, %v2346_v45 }
 0x1cb   : > { %v342_v2 = vadd.s32 4294967288, %v334_v56 }
 0x1cc   : > { %1334 = vrot.lane.b32.xlu0 %v1298_v24, %s2061_s28 }
 0x1d1   : > { %1276 = vrot.lane.b32.xlu2 %v1262_v61, %s2062_s29  ;;  %1274 = vrot.lane.b32.xlu1 %v1261_v14, %s2062_s29 }
 0x1d4   : > { %1268 = vrot.lane.b32.xlu0 %v1262_v61, %s2061_s28 }
 0x213   : > { %v1267_v27 = vpop.permute.xlu2 %1266 }
 0x21b   : > { %v1315_v13 = vpop.permute.xlu2 %1314 }
 0x223   : > { %v1329_v30 = vpop.permute.xlu2 %1328 }
 0x22b   : > { %v1309_v62 = vpop.permute.xlu1 %1308  ;;  %v1277_v54 = vpop.permute.xlu2 %1276 }
 0x22e   : > { %v1307_v29 = vpop.permute.xlu0 %1306 }
 0x22f   : > { %v1321_v47 = vmax.f32 %v1307_v29, %v1315_v13 }
 0x233   : > { %v1327_v8 = vpop.permute.xlu1 %1326 }
 0x236   : > { %v1317_v40 = vpop.permute.xlu0 %1316 }
 0x237   : > { %v1322_v44 = vmax.f32 %v1309_v62, %v1317_v40 }
 0x23b   : > { %v1337_v35 = vpop.permute.xlu1 %1336 }
 0x23c   : > { %v1342_v4 = vmax.f32 %v1329_v30, %v1337_v35 }
 0x23e   : > { %v1398_v39 = vsel %vm1394_vm4, %v1322_v44, %v1342_v4  ;;  %v1335_v41 = vpop.permute.xlu0 %1334 }
 0x23f   : > { %v1341_v43 = vmax.f32 %v1327_v8, %v1335_v41  ;;  %v1402_v46 = vsel %vm2643_vm11, %v1302_v26, %v1398_v39 }
 0x241   : > { %v1397_v18 = vsel %vm1393_vm10, %v1321_v47, %v1341_v43  ;;  %vm2865_vm10 = vmmov %vm2864_vm8 }
 0x242   : > { %v1401_v50 = vsel %vm2617_vm15, %v1301_v15, %v1397_v18 }
 0x243   : > { %v1275_v55 = vpop.permute.xlu1 %1274 }
 0x244   : > { %v1281_v52 = vmax.f32 %v1267_v27, %v1275_v55 }
 0x246   : > { %v1409_v38 = vsel %vm2860_vm9, %v1281_v52, %v1401_v50  ;;  %v1269_v36 = vpop.permute.xlu0 %1268 }
 0x247   : > { %vm1413_vm12 = vcmp.gt.f32.partialorder %v1261_v14, %v1409_v38  ;;  %v1282_v10 = vmax.f32 %v1269_v36, %v1277_v54 }
 0x248   : > { %v1417_v57 = vsel %vm1413_vm12, %v1261_v14, 0.0  ;;  %vm1480_vm12 = vcmp.eq.s32.totalorder %v341_v11, 0 }
 0x249   : > { %v1410_v33 = vsel %vm2861_vm3, %v1282_v10, %v1402_v46  ;;  %vm1425_vm15 = vcmp.gt.f32.partialorder %v1417_v57, 100.0  ;;  %vm1466_vm11 = vcmp.ge.f32.partialorder %v1417_v57, 10.0  ;;  %vm1468_vm5 = vcmp.le.f32.partialorder %v1417_v57, 100.0 }
 0x24a   : > { %vm1414_vm0 = vcmp.gt.f32.partialorder %v1262_v61, %v1410_v33  ;;  %v1673_v9 = vsel %vm1425_vm15, 1.0, %v2060_v0  ;;  %vm2732_vm14 = vmand %vm1466_vm11, %vm1468_vm5  ;;  %vm1420_vm13 = vcmp.lt.f32.partialorder %v1417_v57, 10.0  ;;  %vm1483_vm5 = vcmp.eq.s32.totalorder %v342_v2, 15 }
 0x24b   : > { %v1418_v12 = vsel %vm1414_vm0, %v1262_v61, 0.0  ;;  %v1439_v58 = vrot.slane %v1673_v9, 7  ;;  %v1445_v59 = vrot.slane %v1673_v9, 1  ;;  %v1422_v19 = vsel %vm1420_vm13, 0.0, %v1417_v57 }
 0x24c   : > { %vm1426_vm7 = vcmp.gt.f32.partialorder %v1418_v12, 100.0  ;;  %v1428_v31 = vsel %vm1425_vm15, 1.0, %v1422_v19  ;;  %vm1421_vm1 = vcmp.lt.f32.partialorder %v1418_v12, 10.0  ;;  %vm1467_vm6 = vcmp.ge.f32.partialorder %v1418_v12, 10.0 }
 0x24d   : > { %v1674_v23 = vsel %vm1426_vm7, 1.0, %v2060_v0  ;;  %v1442_v37 = vsel %vm2864_vm8, %v2376_v48, %v1439_v58  ;;  %v1472_v16 = vsel %vm2732_vm14, 0.0, %v1428_v31  ;;  %v1423_v53 = vsel %vm1421_vm1, 0.0, %v1418_v12 }
 0x24e   : > { %v1443_v60 = vadd.f32 %v1673_v9, %v1442_v37  ;;  %v1446_v51 = vrot.slane %v1674_v23, 1  ;;  %v1440_v63 = vrot.slane %v1674_v23, 7  ;;  %v1429_v28 = vsel %vm1426_vm7, 1.0, %v1423_v53 }
 0x24f   : > { %vm1469_vm4 = vcmp.le.f32.partialorder %v1418_v12, 100.0  ;;  %vm1489_vm15 = vcmp.eq.s32.totalorder %v2225_v3, 15 }
 0x250   : > { %v1449_v1 = vsel %vm447_vm2, %v1445_v59, %v1446_v51  ;;  %v1441_v32 = vsel %vm2865_vm10, %v1439_v58, %v1440_v63  ;;  %vm2746_vm9 = vmand %vm1467_vm6, %vm1469_vm4  ;;  %v1448_v61 = vsel %vm447_vm2, %v1446_v51, %v2402_v7  ;;  %vm1486_vm2 = vcmp.eq.s32.totalorder %v2225_v3, 0 }
 0x251   : > { %v1450_v48 = vadd.f32 %v1449_v1, %v1443_v60  ;;  %v1444_v5 = vadd.f32 %v1674_v23, %v1441_v32  ;;  %v1473_v20 = vsel %vm2746_vm9, 0.0, %v1429_v28  ;;  %vm1487_vm3 = vmor %vm1480_vm12, %vm1486_vm2 }
 0x252   : > { %vm1490_vm11 = vmor %vm1487_vm3, %vm1489_vm15 }
 0x253   : > { %1458 = vrot.lane.b32.xlu2 %v1450_v48, %s2061_s28  ;;  %1452 = vrot.lane.b32.xlu0 %v1450_v48, %s2062_s29  ;;  %v1451_v6 = vadd.f32 %v1448_v61, %v1444_v5  ;;  %vm1488_vm13 = vmor %vm1483_vm5, %vm1486_vm2 }
 0x254   : > { %vm1491_vm1 = vmor %vm1488_vm13, %vm1489_vm15 }
 0x255   : > { %1454 = vrot.lane.b32.xlu1 %v1451_v6, %s2062_s29 }
 0x25b   : > { %1460 = vrot.lane.b32.xlu0 %v1451_v6, %s2061_s28 }
 0x2ad   : > { %v1459_v49 = vpop.permute.xlu2 %1458 }
 0x2c5   : > { %v1453_v14 = vpop.permute.xlu0 %1452 }
 0x2c6   : > { %v1456_v7 = vadd.f32 %v1453_v14, %v1450_v48 }
 0x2c7   : > { %v1455_v21 = vpop.permute.xlu1 %1454 }
 0x2c8   : > { %v1462_v17 = vadd.f32 %v1459_v49, %v1456_v7  ;;  %v1457_v25 = vadd.f32 %v1455_v21, %v1451_v6 }
 0x2ca   : > { %v1464_v24 = vsub.f32 %v1462_v17, %v1673_v9 }
 0x2cc   : > { %v1474_v45 = vsel %vm2732_vm14, %v1464_v24, 0.0  ;;  %vm2868_vm14 = vcmask 130048  }
 0x2cd   : > { %vm1476_vm0 = vcmp.gt.f32.partialorder %v1474_v45, 0.0  ;;  %v1461_v15 = vpop.permute.xlu0 %1460  ;;  %vm2869_vm4 = vmmov %vm2868_vm14 }
 0x2ce   : > { %v1478_v26 = vsel %vm1476_vm0, 1.0, %v1472_v16  ;;  %v1463_v27 = vadd.f32 %v1461_v15, %v1457_v25 }
 0x2cf   : > { %v1492_v62 = vsel %vm1490_vm11, 0.0, %v1478_v26 }
 0x2d0   : > { %vm1494_vm7 = vcmp.gt.f32.partialorder %v1492_v62, 0.0  ;;  %v1465_v29 = vsub.f32 %v1463_v27, %v1674_v23 }
 0x2d1   : > { %v1675_v13 = vsel %vm1494_vm7, 1.0, %v2060_v0 }
 0x2d2   : > { %1500 = vst.msk [vmem:[%s319_s7] sm:$0xff] %vm2868_vm14, %v1675_v13  ;;  %v1475_v8 = vsel %vm2746_vm9, %v1465_v29, 0.0 }
 0x2d3   : > { %vm1477_vm6 = vcmp.gt.f32.partialorder %v1475_v8, 0.0 }
 0x2d4   : > { %v1479_v40 = vsel %vm1477_vm6, 1.0, %v1473_v20 }
 0x2d5   : > { %v1493_v30 = vsel %vm1491_vm1, 0.0, %v1479_v40 }
 0x2d6   : > { %vm1495_vm8 = vcmp.gt.f32.partialorder %v1493_v30, 0.0 }
 0x2d7   : > { %v1676_v35 = vsel %vm1495_vm8, 1.0, %v2060_v0 }
 0x2d8   : > { %1501 = vst.msk [vmem:[%s319_s7 + $0x8] sm:$0xff] %vm2869_vm4, %v1676_v35 }
 0x2d9   : > { %1996 = shalt.err (!%p1993_p13)
}
 0x2da   : > { %s2066_s1 = smov 128   ;;  %s2067_s17 = smov 8  }
 0x2db   : > { %1699 = dma.vmem_to_hbm [thread:$0]  (%p2143_p9), %s1518_s15, 256, %s1520_s6, %s1503_s11, %s2066_s1, %s2066_s1, %s2067_s17  }
 0x2dc PF: > { %s2870_s16 = sld [smem:[#allocation15_spill]]  ;;  %s1534_s26 = sand.u32 1, %s2035_s12  }
 0x2dd   : > { %p1712_p0 = pnand %p1657_p12, %p2150_p11  ;;  %s1535_s28 = scalar_lea.sflag [#allocation5], %s1534_s26 }
 0x2df   : > { %p1713_p1 = pneg %p1712_p0 }
 0x2e1   : > { %2030 = dma.done.wait (%p1713_p1), %s1535_s28, 256  }
 0x2e2   : > { %2032 = vsyncadd (%p1713_p1), %s1535_s28, 4294967040  ;;  %s22_s17 = sadd.s32 1, %s2870_s16   ;;  %s2871_s29 = sld [smem:[#allocation13_spill]] }
 0x2e3   : > { %p19_p2 = scmp.ge.s32.totalorder %s22_s17, 4   ;;  %s2872_s14 = sld [smem:[#allocation17_spill]] }
 0x2e4   : > { %s2873_s15 = sld [smem:[#allocation14_spill]]  ;;  %s2875_s12 = smov %s2039_s13 }
 0x2e5   : > { %s2874_s16 = sld [smem:[#allocation16_spill]]  ;;  %21 = sbr.rel (!%p19_p2) target bundleno = 10 (0xa), region = 107 }
 0x2e8   : > { %s2876_s13 = smov %s2871_s29 }
 0x2ea   :  { %1541 = vsyncpa [#allocation4], 1 }
 0x2eb   :  { %1543 = vsyncpa [#allocation4 + $0x1], 1 }
 0x2ec   :  { %1544 = vsyncpa [#allocation7], 1 }
 0x2ed   :  { %1546 = vsyncpa [#allocation7 + $0x1], 1 }
 0x2ee   :  { %1547 = vsyncpa [#allocation5], 1 }
 0x2ef   :  { %1549 = vsyncpa [#allocation5 + $0x1], 1 }

</bundles_post_ra>
